<compile_context>
chip_gen: v5e
topology: v5e:2x2
jax: 0.10.0
libtpu: 0.0.40
codegen_flags: <defaults>
</compile_context>

<pallas_src>
import functools

import jax
import jax.numpy as jnp
import numpy as np
from jax.experimental import pallas as pl
from jax.experimental.pallas import tpu as pltpu


def _group_gru_kernel(x_ref, wih_ref, whh_ref, bgi_ref, bhn_ref, h0_ref,
                      out_ref, gi_ref, *, steps: int, hidden: int,
                      batch_tile: int):
    """One grid step = one batch tile, all groups fused (block-diagonal weights).

    Block shapes:
      x_ref   : (tb, S, I)
      wih_ref : (I, 3H)        fused block-diagonal, gate-major columns [r|z|n]
      whh_ref : (H, 3H)
      bgi_ref : (1, 3H)        b_ih with (b_ih_r+b_hh_r, b_ih_z+b_hh_z, b_ih_n)
      bhn_ref : (1, H)         b_hh_n (kept separate: multiplied by r)
      h0_ref  : (tb, H)
      out_ref : (tb, S, H)
      gi_ref  : VMEM scratch (S, tb, 3H) f32, time-major input projections
    """
    H = hidden
    w_ih = wih_ref[...]
    w_hh = whh_ref[...]
    b_gi = bgi_ref[...].astype(jnp.float32)   # (1, 3H)
    b_hn = bhn_ref[...].astype(jnp.float32)   # (1, H)

    # Precompute input projections for every time step (off the serial path).
    # One clean 2D MXU matmul per batch row; results stored time-major so the
    # per-step read below is a dynamic index on the leading (untiled) axis.
    for b in range(batch_tile):
        gi_b = jnp.dot(x_ref[b], w_ih,
                       preferred_element_type=jnp.float32)        # (S, 3H)
        gi_ref[:, b, :] = gi_b + b_gi

    h0 = h0_ref[...].astype(jnp.float32)                           # (tb, H)

    def step(t, h):
        # Recurrent projection for all groups at once (block-diagonal W_hh).
        gh = jnp.dot(h.astype(w_hh.dtype), w_hh,
                     preferred_element_type=jnp.float32)           # (tb, 3H)
        gi_t = gi_ref[t]                                           # (tb, 3H)
        r = jax.nn.sigmoid(gi_t[:, :H] + gh[:, :H])
        z = jax.nn.sigmoid(gi_t[:, H:2 * H] + gh[:, H:2 * H])
        n = jnp.tanh(gi_t[:, 2 * H:] + r * (gh[:, 2 * H:] + b_hn))
        h_new = (1.0 - z) * n + z * h
        # Per-step store (uses the otherwise idle vst slot, no stack epilogue).
        out_ref[:, pl.ds(t, 1), :] = h_new[:, None, :].astype(out_ref.dtype)
        return h_new

    jax.lax.fori_loop(0, steps, step, h0, unroll=(steps <= 8))


def group_rnn_forward(inputs, hidden_state, params, *, groups: int,
                      batch_tile: int | None = None):
    """Pallas GroupRNN (GRU cells) forward.

    inputs:        (batch, steps, input_size)
    hidden_state:  list of `groups` arrays, each (1, batch, hidden_size // groups)
    params:        per-group stacked GRU weights (PyTorch layout):
                   w_ih (G, 3Hg, Ig), w_hh (G, 3Hg, Hg), b_ih (G, 3Hg), b_hh (G, 3Hg)
    returns: outputs (batch, steps, hidden_size), list of final states (1, batch, Hg)
    """
    B, S, I = inputs.shape
    G = groups
    Ig = I // G
    Hg = params["w_hh"].shape[-1]
    H = G * Hg

    tb = B if batch_tile is None else batch_tile
    assert B % tb == 0, "batch must be divisible by batch_tile"

    wdt = params["w_ih"].dtype
    eye = jnp.eye(G, dtype=wdt)

    # Fused block-diagonal weights, gate-major columns [r | z | n]; within each
    # gate slab group g occupies columns g*Hg:(g+1)*Hg (matches h / out layout).
    w_ih_g = params["w_ih"].reshape(G, 3, Hg, Ig).transpose(0, 1, 3, 2)  # (G,3,Ig,Hg)
    w_hh_g = params["w_hh"].reshape(G, 3, Hg, Hg).transpose(0, 1, 3, 2)  # (G,3,Hg,Hg)
    w_ih_bd = jnp.einsum("gqik,gh->giqhk", w_ih_g, eye).reshape(G * Ig, 3 * H)
    w_hh_bd = jnp.einsum("gqik,gh->giqhk", w_hh_g, eye).reshape(G * Hg, 3 * H)

    b_ih_f = params["b_ih"].reshape(G, 3, Hg).transpose(1, 0, 2).reshape(3 * H)
    b_hh_f = params["b_hh"].reshape(G, 3, Hg).transpose(1, 0, 2).reshape(3 * H)
    # Fold r/z biases (b_ih + b_hh); keep b_hh_n separate (multiplied by r).
    b_gi = jnp.concatenate([b_ih_f[:2 * H] + b_hh_f[:2 * H], b_ih_f[2 * H:]])[None, :]
    b_hn = b_hh_f[2 * H:][None, :]

    h0 = jnp.concatenate([h[0] for h in hidden_state], axis=-1)     # (B, H)

    kernel = functools.partial(_group_gru_kernel, steps=S, hidden=H,
                               batch_tile=tb)

    outputs = pl.pallas_call(
        kernel,
        out_shape=jax.ShapeDtypeStruct((B, S, H), inputs.dtype),
        grid_spec=pltpu.PrefetchScalarGridSpec(
            num_scalar_prefetch=0,
            grid=(B // tb,),
            in_specs=[
                pl.BlockSpec((tb, S, I), lambda b: (b, 0, 0)),
                pl.BlockSpec((I, 3 * H), lambda b: (0, 0)),
                pl.BlockSpec((H, 3 * H), lambda b: (0, 0)),
                pl.BlockSpec((1, 3 * H), lambda b: (0, 0)),
                pl.BlockSpec((1, H), lambda b: (0, 0)),
                pl.BlockSpec((tb, H), lambda b: (b, 0)),
            ],
            out_specs=pl.BlockSpec((tb, S, H), lambda b: (b, 0, 0)),
            scratch_shapes=[pltpu.VMEM((S, tb, 3 * H), jnp.float32)],
        ),
        compiler_params=pltpu.CompilerParams(
            dimension_semantics=("parallel",)),
    )(inputs, w_ih_bd, w_hh_bd, b_gi, b_hn, h0)

    # Final states are simply the last time step of each group's output slab.
    out_states = [outputs[:, -1, g * Hg:(g + 1) * Hg][None] for g in range(G)]
    return outputs, out_states


# ----------------------- pure-JAX reference (PyTorch GRU semantics) -----------------------
def _gru_ref(x, h0, w_ih, w_hh, b_ih, b_hh):
    B, S, _ = x.shape
    Hg = w_hh.shape[-1]
    h = h0
    outs = []
    for t in range(S):
        gi = x[:, t, :] @ w_ih.T + b_ih
        gh = h @ w_hh.T + b_hh
        i_r, i_z, i_n = gi[:, :Hg], gi[:, Hg:2 * Hg], gi[:, 2 * Hg:]
        h_r, h_z, h_n = gh[:, :Hg], gh[:, Hg:2 * Hg], gh[:, 2 * Hg:]
        r = jax.nn.sigmoid(i_r + h_r)
        z = jax.nn.sigmoid(i_z + h_z)
        n = jnp.tanh(i_n + r * h_n)
        h = (1.0 - z) * n + z * h
        outs.append(h)
    return jnp.stack(outs, axis=1), h


def _group_rnn_ref(inputs, hidden_state, params, groups):
    B, S, I = inputs.shape
    Ig = I // groups
    x = inputs.reshape(B, S, groups, Ig)
    outs, states = [], []
    for g in range(groups):
        o, h = _gru_ref(x[:, :, g, :], hidden_state[g][0],
                        params["w_ih"][g], params["w_hh"][g],
                        params["b_ih"][g], params["b_hh"][g])
        outs.append(o)
        states.append(h[None])
    return jnp.concatenate(outs, axis=2), states


if __name__ == "__main__":
    # Module config: GroupRNN(input_size=16, hidden_size=32, groups=2, rnn_type="GRU")
    batch, steps, input_size, hidden_size, groups = 2, 8, 16, 32, 2
    Ig, Hg = input_size // groups, hidden_size // groups

    key = jax.random.PRNGKey(0)
    k_x, k_h, k_wih, k_whh, k_bih, k_bhh = jax.random.split(key, 6)

    inputs = jax.random.normal(k_x, (batch, steps, input_size), dtype=jnp.float32)
    hidden_state = [
        jax.random.normal(jax.random.fold_in(k_h, g), (1, batch, Hg), dtype=jnp.float32)
        for g in range(groups)
    ]

    # Deterministic param init, PyTorch-style U(-1/sqrt(Hg), 1/sqrt(Hg)), per group.
    bound = 1.0 / np.sqrt(Hg)
    params = {
        "w_ih": jax.random.uniform(k_wih, (groups, 3 * Hg, Ig), jnp.float32, -bound, bound),
        "w_hh": jax.random.uniform(k_whh, (groups, 3 * Hg, Hg), jnp.float32, -bound, bound),
        "b_ih": jax.random.uniform(k_bih, (groups, 3 * Hg), jnp.float32, -bound, bound),
        "b_hh": jax.random.uniform(k_bhh, (groups, 3 * Hg), jnp.float32, -bound, bound),
    }

    outputs, out_states = group_rnn_forward(inputs, hidden_state, params, groups=groups)
    jax.block_until_ready(outputs)
    jax.block_until_ready(out_states)

    # Sanity check against a pure-JAX reference of the PyTorch semantics.
    ref_out, ref_states = _group_rnn_ref(inputs, hidden_state, params, groups)
    np.testing.assert_allclose(np.asarray(outputs), np.asarray(ref_out), rtol=1e-5, atol=1e-5)
    for g in range(groups):
        np.testing.assert_allclose(np.asarray(out_states[g]), np.asarray(ref_states[g]),
                                   rtol=1e-5, atol=1e-5)

    assert outputs.shape == (batch, steps, hidden_size)
    assert len(out_states) == groups and out_states[0].shape == (1, batch, Hg)
    print("KERNEL_OK")
</pallas_src>

<mosaic_0001>
module attributes {stable_mosaic.version = 11 : i64} {
  func.func @_group_gru_kernel(%arg0: i32, %arg1: memref<2x8x16xf32, #tpu.memory_space<vmem>>, %arg2: memref<16x96xf32, #tpu.memory_space<vmem>>, %arg3: memref<32x96xf32, #tpu.memory_space<vmem>>, %arg4: memref<1x96xf32, #tpu.memory_space<vmem>>, %arg5: memref<1x32xf32, #tpu.memory_space<vmem>>, %arg6: memref<2x32xf32, #tpu.memory_space<vmem>>, %arg7: memref<2x8x32xf32, #tpu.memory_space<vmem>>, %arg8: memref<8x2x96xf32, #tpu.memory_space<vmem>>) attributes {dimension_semantics = [#tpu.dimension_semantics<parallel>], iteration_bounds = array<i64: 1>, scalar_prefetch = 0 : i64, scratch_operands = 1 : i64, tpu.core_type = #tpu.core_type<tc>, window_params = [{transform_indices = @transform_0, window_bounds = array<i64: 2, 8, 16>}, {pipeline_mode = #tpu.pipeline_mode<synchronous>, transform_indices = @transform_1, window_bounds = array<i64: 16, 96>}, {pipeline_mode = #tpu.pipeline_mode<synchronous>, transform_indices = @transform_2, window_bounds = array<i64: 32, 96>}, {pipeline_mode = #tpu.pipeline_mode<synchronous>, transform_indices = @transform_3, window_bounds = array<i64: 1, 96>}, {pipeline_mode = #tpu.pipeline_mode<synchronous>, transform_indices = @transform_4, window_bounds = array<i64: 1, 32>}, {transform_indices = @transform_5, window_bounds = array<i64: 2, 32>}, {transform_indices = @transform_6, window_bounds = array<i64: 2, 8, 32>}]} {
    %c0 = arith.constant 0 : index
    %c0_0 = arith.constant 0 : index
    %0 = vector.load %arg2[%c0, %c0_0] : memref<16x96xf32, #tpu.memory_space<vmem>>, vector<16x96xf32>
    %c0_1 = arith.constant 0 : index
    %c0_2 = arith.constant 0 : index
    %1 = vector.load %arg3[%c0_1, %c0_2] : memref<32x96xf32, #tpu.memory_space<vmem>>, vector<32x96xf32>
    %c0_3 = arith.constant 0 : index
    %c0_4 = arith.constant 0 : index
    %2 = vector.load %arg4[%c0_3, %c0_4] : memref<1x96xf32, #tpu.memory_space<vmem>>, vector<1x96xf32>
    %c0_5 = arith.constant 0 : index
    %c0_6 = arith.constant 0 : index
    %3 = vector.load %arg5[%c0_5, %c0_6] : memref<1x32xf32, #tpu.memory_space<vmem>>, vector<1x32xf32>
    %c0_7 = arith.constant 0 : index
    %c0_8 = arith.constant 0 : index
    %c0_9 = arith.constant 0 : index
    %4 = vector.load %arg1[%c0_7, %c0_8, %c0_9] : memref<2x8x16xf32, #tpu.memory_space<vmem>>, vector<1x8x16xf32>
    %5 = vector.shape_cast %4 : vector<1x8x16xf32> to vector<8x16xf32>
    %cst = arith.constant dense<0.000000e+00> : vector<8x96xf32>
    %6 = tpu.matmul %5, %0, %cst {dimension_numbers = #tpu.dot_dimension_numbers<[1], [0], [0], [1], [0, 0, 1, 1], [], []>} : vector<8x16xf32>, vector<16x96xf32>, vector<8x96xf32> -> vector<8x96xf32>
    %7 = vector.broadcast %2 : vector<1x96xf32> to vector<8x96xf32>
    %8 = arith.addf %6, %7 : vector<8x96xf32>
    %c0_10 = arith.constant 0 : index
    %c0_11 = arith.constant 0 : index
    %c0_12 = arith.constant 0 : index
    %9 = vector.load %arg8[%c0_10, %c0_11, %c0_12] : memref<8x2x96xf32, #tpu.memory_space<vmem>>, vector<8x1x96xf32>
    %10 = vector.shape_cast %9 : vector<8x1x96xf32> to vector<8x96xf32>
    %11 = vector.shape_cast %8 : vector<8x96xf32> to vector<8x1x96xf32>
    tpu.vector_store %arg8[%c0_10, %c0_11, %c0_12], %11 {strides = array<i32>} : memref<8x2x96xf32, #tpu.memory_space<vmem>>, vector<8x1x96xf32>,
    %c1 = arith.constant 1 : index
    %c0_13 = arith.constant 0 : index
    %c0_14 = arith.constant 0 : index
    %12 = vector.load %arg1[%c1, %c0_13, %c0_14] : memref<2x8x16xf32, #tpu.memory_space<vmem>>, vector<1x8x16xf32>
    %13 = vector.shape_cast %12 : vector<1x8x16xf32> to vector<8x16xf32>
    %cst_15 = arith.constant dense<0.000000e+00> : vector<8x96xf32>
    %14 = tpu.matmul %13, %0, %cst_15 {dimension_numbers = #tpu.dot_dimension_numbers<[1], [0], [0], [1], [0, 0, 1, 1], [], []>} : vector<8x16xf32>, vector<16x96xf32>, vector<8x96xf32> -> vector<8x96xf32>
    %15 = vector.broadcast %2 : vector<1x96xf32> to vector<8x96xf32>
    %16 = arith.addf %14, %15 : vector<8x96xf32>
    %c0_16 = arith.constant 0 : index
    %c1_17 = arith.constant 1 : index
    %c0_18 = arith.constant 0 : index
    %17 = vector.load %arg8[%c0_16, %c1_17, %c0_18] : memref<8x2x96xf32, #tpu.memory_space<vmem>>, vector<8x1x96xf32>
    %18 = vector.shape_cast %17 : vector<8x1x96xf32> to vector<8x96xf32>
    %19 = vector.shape_cast %16 : vector<8x96xf32> to vector<8x1x96xf32>
    tpu.vector_store %arg8[%c0_16, %c1_17, %c0_18], %19 {strides = array<i32>} : memref<8x2x96xf32, #tpu.memory_space<vmem>>, vector<8x1x96xf32>,
    %c0_19 = arith.constant 0 : index
    %c0_20 = arith.constant 0 : index
    %20 = vector.load %arg6[%c0_19, %c0_20] : memref<2x32xf32, #tpu.memory_space<vmem>>, vector<2x32xf32>
    %c0_i32 = arith.constant 0 : i32
    %cst_21 = arith.constant dense<0.000000e+00> : vector<2x96xf32>
    %21 = tpu.matmul %20, %1, %cst_21 {dimension_numbers = #tpu.dot_dimension_numbers<[1], [0], [0], [1], [0, 0, 1, 1], [], []>} : vector<2x32xf32>, vector<32x96xf32>, vector<2x96xf32> -> vector<2x96xf32>
    %22 = arith.index_cast %c0_i32 : i32 to index
    %c0_22 = arith.constant 0 : index
    %c0_23 = arith.constant 0 : index
    %23 = vector.load %arg8[%22, %c0_22, %c0_23] : memref<8x2x96xf32, #tpu.memory_space<vmem>>, vector<1x2x96xf32>
    %24 = vector.shape_cast %23 : vector<1x2x96xf32> to vector<2x96xf32>
    %25 = vector.extract_strided_slice %24 {offsets = [0, 0], sizes = [2, 32], strides = [1, 1]} : vector<2x96xf32> to vector<2x32xf32>
    %26 = vector.extract_strided_slice %21 {offsets = [0, 0], sizes = [2, 32], strides = [1, 1]} : vector<2x96xf32> to vector<2x32xf32>
    %27 = arith.addf %25, %26 : vector<2x32xf32>
    %28 = arith.negf %27 : vector<2x32xf32>
    %29 = math.exp %28 : vector<2x32xf32>
    %cst_24 = arith.constant 1.000000e+00 : f32
    %30 = vector.broadcast %cst_24 : f32 to vector<2x32xf32>
    %31 = arith.addf %30, %29 : vector<2x32xf32>
    %32 = arith.divf %30, %31 : vector<2x32xf32>
    %33 = vector.extract_strided_slice %24 {offsets = [0, 32], sizes = [2, 32], strides = [1, 1]} : vector<2x96xf32> to vector<2x32xf32>
    %34 = vector.extract_strided_slice %21 {offsets = [0, 32], sizes = [2, 32], strides = [1, 1]} : vector<2x96xf32> to vector<2x32xf32>
    %35 = arith.addf %33, %34 : vector<2x32xf32>
    %36 = arith.negf %35 : vector<2x32xf32>
    %37 = math.exp %36 : vector<2x32xf32>
    %cst_25 = arith.constant 1.000000e+00 : f32
    %38 = vector.broadcast %cst_25 : f32 to vector<2x32xf32>
    %39 = arith.addf %38, %37 : vector<2x32xf32>
    %40 = arith.divf %38, %39 : vector<2x32xf32>
    %41 = vector.extract_strided_slice %24 {offsets = [0, 64], sizes = [2, 32], strides = [1, 1]} : vector<2x96xf32> to vector<2x32xf32>
    %42 = vector.extract_strided_slice %21 {offsets = [0, 64], sizes = [2, 32], strides = [1, 1]} : vector<2x96xf32> to vector<2x32xf32>
    %43 = vector.broadcast %3 : vector<1x32xf32> to vector<2x32xf32>
    %44 = arith.addf %42, %43 : vector<2x32xf32>
    %45 = arith.mulf %32, %44 : vector<2x32xf32>
    %46 = arith.addf %41, %45 : vector<2x32xf32>
    %47 = math.tanh %46 : vector<2x32xf32>
    %cst_26 = arith.constant 1.000000e+00 : f32
    %48 = vector.broadcast %cst_26 : f32 to vector<2x32xf32>
    %49 = arith.subf %48, %40 : vector<2x32xf32>
    %50 = arith.mulf %49, %47 : vector<2x32xf32>
    %51 = arith.mulf %40, %20 : vector<2x32xf32>
    %52 = arith.addf %50, %51 : vector<2x32xf32>
    %53 = vector.shape_cast %52 : vector<2x32xf32> to vector<2x1x32xf32>
    %c0_27 = arith.constant 0 : index
    %54 = arith.index_cast %c0_i32 : i32 to index
    %c0_28 = arith.constant 0 : index
    %55 = vector.load %arg7[%c0_27, %54, %c0_28] : memref<2x8x32xf32, #tpu.memory_space<vmem>>, vector<2x1x32xf32>
    tpu.vector_store %arg7[%c0_27, %54, %c0_28], %53 {strides = array<i32>} : memref<2x8x32xf32, #tpu.memory_space<vmem>>, vector<2x1x32xf32>,
    %c1_i32 = arith.constant 1 : i32
    %cst_29 = arith.constant dense<0.000000e+00> : vector<2x96xf32>
    %56 = tpu.matmul %52, %1, %cst_29 {dimension_numbers = #tpu.dot_dimension_numbers<[1], [0], [0], [1], [0, 0, 1, 1], [], []>} : vector<2x32xf32>, vector<32x96xf32>, vector<2x96xf32> -> vector<2x96xf32>
    %57 = arith.index_cast %c1_i32 : i32 to index
    %c0_30 = arith.constant 0 : index
    %c0_31 = arith.constant 0 : index
    %58 = vector.load %arg8[%57, %c0_30, %c0_31] : memref<8x2x96xf32, #tpu.memory_space<vmem>>, vector<1x2x96xf32>
    %59 = vector.shape_cast %58 : vector<1x2x96xf32> to vector<2x96xf32>
    %60 = vector.extract_strided_slice %59 {offsets = [0, 0], sizes = [2, 32], strides = [1, 1]} : vector<2x96xf32> to vector<2x32xf32>
    %61 = vector.extract_strided_slice %56 {offsets = [0, 0], sizes = [2, 32], strides = [1, 1]} : vector<2x96xf32> to vector<2x32xf32>
    %62 = arith.addf %60, %61 : vector<2x32xf32>
    %63 = arith.negf %62 : vector<2x32xf32>
    %64 = math.exp %63 : vector<2x32xf32>
    %cst_32 = arith.constant 1.000000e+00 : f32
    %65 = vector.broadcast %cst_32 : f32 to vector<2x32xf32>
    %66 = arith.addf %65, %64 : vector<2x32xf32>
    %67 = arith.divf %65, %66 : vector<2x32xf32>
    %68 = vector.extract_strided_slice %59 {offsets = [0, 32], sizes = [2, 32], strides = [1, 1]} : vector<2x96xf32> to vector<2x32xf32>
    %69 = vector.extract_strided_slice %56 {offsets = [0, 32], sizes = [2, 32], strides = [1, 1]} : vector<2x96xf32> to vector<2x32xf32>
    %70 = arith.addf %68, %69 : vector<2x32xf32>
    %71 = arith.negf %70 : vector<2x32xf32>
    %72 = math.exp %71 : vector<2x32xf32>
    %cst_33 = arith.constant 1.000000e+00 : f32
    %73 = vector.broadcast %cst_33 : f32 to vector<2x32xf32>
    %74 = arith.addf %73, %72 : vector<2x32xf32>
    %75 = arith.divf %73, %74 : vector<2x32xf32>
    %76 = vector.extract_strided_slice %59 {offsets = [0, 64], sizes = [2, 32], strides = [1, 1]} : vector<2x96xf32> to vector<2x32xf32>
    %77 = vector.extract_strided_slice %56 {offsets = [0, 64], sizes = [2, 32], strides = [1, 1]} : vector<2x96xf32> to vector<2x32xf32>
    %78 = vector.broadcast %3 : vector<1x32xf32> to vector<2x32xf32>
    %79 = arith.addf %77, %78 : vector<2x32xf32>
    %80 = arith.mulf %67, %79 : vector<2x32xf32>
    %81 = arith.addf %76, %80 : vector<2x32xf32>
    %82 = math.tanh %81 : vector<2x32xf32>
    %cst_34 = arith.constant 1.000000e+00 : f32
    %83 = vector.broadcast %cst_34 : f32 to vector<2x32xf32>
    %84 = arith.subf %83, %75 : vector<2x32xf32>
    %85 = arith.mulf %84, %82 : vector<2x32xf32>
    %86 = arith.mulf %75, %52 : vector<2x32xf32>
    %87 = arith.addf %85, %86 : vector<2x32xf32>
    %88 = vector.shape_cast %87 : vector<2x32xf32> to vector<2x1x32xf32>
    %c0_35 = arith.constant 0 : index
    %89 = arith.index_cast %c1_i32 : i32 to index
    %c0_36 = arith.constant 0 : index
    %90 = vector.load %arg7[%c0_35, %89, %c0_36] : memref<2x8x32xf32, #tpu.memory_space<vmem>>, vector<2x1x32xf32>
    tpu.vector_store %arg7[%c0_35, %89, %c0_36], %88 {strides = array<i32>} : memref<2x8x32xf32, #tpu.memory_space<vmem>>, vector<2x1x32xf32>,
    %c2_i32 = arith.constant 2 : i32
    %cst_37 = arith.constant dense<0.000000e+00> : vector<2x96xf32>
    %91 = tpu.matmul %87, %1, %cst_37 {dimension_numbers = #tpu.dot_dimension_numbers<[1], [0], [0], [1], [0, 0, 1, 1], [], []>} : vector<2x32xf32>, vector<32x96xf32>, vector<2x96xf32> -> vector<2x96xf32>
    %92 = arith.index_cast %c2_i32 : i32 to index
    %c0_38 = arith.constant 0 : index
    %c0_39 = arith.constant 0 : index
    %93 = vector.load %arg8[%92, %c0_38, %c0_39] : memref<8x2x96xf32, #tpu.memory_space<vmem>>, vector<1x2x96xf32>
    %94 = vector.shape_cast %93 : vector<1x2x96xf32> to vector<2x96xf32>
    %95 = vector.extract_strided_slice %94 {offsets = [0, 0], sizes = [2, 32], strides = [1, 1]} : vector<2x96xf32> to vector<2x32xf32>
    %96 = vector.extract_strided_slice %91 {offsets = [0, 0], sizes = [2, 32], strides = [1, 1]} : vector<2x96xf32> to vector<2x32xf32>
    %97 = arith.addf %95, %96 : vector<2x32xf32>
    %98 = arith.negf %97 : vector<2x32xf32>
    %99 = math.exp %98 : vector<2x32xf32>
    %cst_40 = arith.constant 1.000000e+00 : f32
    %100 = vector.broadcast %cst_40 : f32 to vector<2x32xf32>
    %101 = arith.addf %100, %99 : vector<2x32xf32>
    %102 = arith.divf %100, %101 : vector<2x32xf32>
    %103 = vector.extract_strided_slice %94 {offsets = [0, 32], sizes = [2, 32], strides = [1, 1]} : vector<2x96xf32> to vector<2x32xf32>
    %104 = vector.extract_strided_slice %91 {offsets = [0, 32], sizes = [2, 32], strides = [1, 1]} : vector<2x96xf32> to vector<2x32xf32>
    %105 = arith.addf %103, %104 : vector<2x32xf32>
    %106 = arith.negf %105 : vector<2x32xf32>
    %107 = math.exp %106 : vector<2x32xf32>
    %cst_41 = arith.constant 1.000000e+00 : f32
    %108 = vector.broadcast %cst_41 : f32 to vector<2x32xf32>
    %109 = arith.addf %108, %107 : vector<2x32xf32>
    %110 = arith.divf %108, %109 : vector<2x32xf32>
    %111 = vector.extract_strided_slice %94 {offsets = [0, 64], sizes = [2, 32], strides = [1, 1]} : vector<2x96xf32> to vector<2x32xf32>
    %112 = vector.extract_strided_slice %91 {offsets = [0, 64], sizes = [2, 32], strides = [1, 1]} : vector<2x96xf32> to vector<2x32xf32>
    %113 = vector.broadcast %3 : vector<1x32xf32> to vector<2x32xf32>
    %114 = arith.addf %112, %113 : vector<2x32xf32>
    %115 = arith.mulf %102, %114 : vector<2x32xf32>
    %116 = arith.addf %111, %115 : vector<2x32xf32>
    %117 = math.tanh %116 : vector<2x32xf32>
    %cst_42 = arith.constant 1.000000e+00 : f32
    %118 = vector.broadcast %cst_42 : f32 to vector<2x32xf32>
    %119 = arith.subf %118, %110 : vector<2x32xf32>
    %120 = arith.mulf %119, %117 : vector<2x32xf32>
    %121 = arith.mulf %110, %87 : vector<2x32xf32>
    %122 = arith.addf %120, %121 : vector<2x32xf32>
    %123 = vector.shape_cast %122 : vector<2x32xf32> to vector<2x1x32xf32>
    %c0_43 = arith.constant 0 : index
    %124 = arith.index_cast %c2_i32 : i32 to index
    %c0_44 = arith.constant 0 : index
    %125 = vector.load %arg7[%c0_43, %124, %c0_44] : memref<2x8x32xf32, #tpu.memory_space<vmem>>, vector<2x1x32xf32>
    tpu.vector_store %arg7[%c0_43, %124, %c0_44], %123 {strides = array<i32>} : memref<2x8x32xf32, #tpu.memory_space<vmem>>, vector<2x1x32xf32>,
    %c3_i32 = arith.constant 3 : i32
    %cst_45 = arith.constant dense<0.000000e+00> : vector<2x96xf32>
    %126 = tpu.matmul %122, %1, %cst_45 {dimension_numbers = #tpu.dot_dimension_numbers<[1], [0], [0], [1], [0, 0, 1, 1], [], []>} : vector<2x32xf32>, vector<32x96xf32>, vector<2x96xf32> -> vector<2x96xf32>
    %127 = arith.index_cast %c3_i32 : i32 to index
    %c0_46 = arith.constant 0 : index
    %c0_47 = arith.constant 0 : index
    %128 = vector.load %arg8[%127, %c0_46, %c0_47] : memref<8x2x96xf32, #tpu.memory_space<vmem>>, vector<1x2x96xf32>
    %129 = vector.shape_cast %128 : vector<1x2x96xf32> to vector<2x96xf32>
    %130 = vector.extract_strided_slice %129 {offsets = [0, 0], sizes = [2, 32], strides = [1, 1]} : vector<2x96xf32> to vector<2x32xf32>
    %131 = vector.extract_strided_slice %126 {offsets = [0, 0], sizes = [2, 32], strides = [1, 1]} : vector<2x96xf32> to vector<2x32xf32>
    %132 = arith.addf %130, %131 : vector<2x32xf32>
    %133 = arith.negf %132 : vector<2x32xf32>
    %134 = math.exp %133 : vector<2x32xf32>
    %cst_48 = arith.constant 1.000000e+00 : f32
    %135 = vector.broadcast %cst_48 : f32 to vector<2x32xf32>
    %136 = arith.addf %135, %134 : vector<2x32xf32>
    %137 = arith.divf %135, %136 : vector<2x32xf32>
    %138 = vector.extract_strided_slice %129 {offsets = [0, 32], sizes = [2, 32], strides = [1, 1]} : vector<2x96xf32> to vector<2x32xf32>
    %139 = vector.extract_strided_slice %126 {offsets = [0, 32], sizes = [2, 32], strides = [1, 1]} : vector<2x96xf32> to vector<2x32xf32>
    %140 = arith.addf %138, %139 : vector<2x32xf32>
    %141 = arith.negf %140 : vector<2x32xf32>
    %142 = math.exp %141 : vector<2x32xf32>
    %cst_49 = arith.constant 1.000000e+00 : f32
    %143 = vector.broadcast %cst_49 : f32 to vector<2x32xf32>
    %144 = arith.addf %143, %142 : vector<2x32xf32>
    %145 = arith.divf %143, %144 : vector<2x32xf32>
    %146 = vector.extract_strided_slice %129 {offsets = [0, 64], sizes = [2, 32], strides = [1, 1]} : vector<2x96xf32> to vector<2x32xf32>
    %147 = vector.extract_strided_slice %126 {offsets = [0, 64], sizes = [2, 32], strides = [1, 1]} : vector<2x96xf32> to vector<2x32xf32>
    %148 = vector.broadcast %3 : vector<1x32xf32> to vector<2x32xf32>
    %149 = arith.addf %147, %148 : vector<2x32xf32>
    %150 = arith.mulf %137, %149 : vector<2x32xf32>
    %151 = arith.addf %146, %150 : vector<2x32xf32>
    %152 = math.tanh %151 : vector<2x32xf32>
    %cst_50 = arith.constant 1.000000e+00 : f32
    %153 = vector.broadcast %cst_50 : f32 to vector<2x32xf32>
    %154 = arith.subf %153, %145 : vector<2x32xf32>
    %155 = arith.mulf %154, %152 : vector<2x32xf32>
    %156 = arith.mulf %145, %122 : vector<2x32xf32>
    %157 = arith.addf %155, %156 : vector<2x32xf32>
    %158 = vector.shape_cast %157 : vector<2x32xf32> to vector<2x1x32xf32>
    %c0_51 = arith.constant 0 : index
    %159 = arith.index_cast %c3_i32 : i32 to index
    %c0_52 = arith.constant 0 : index
    %160 = vector.load %arg7[%c0_51, %159, %c0_52] : memref<2x8x32xf32, #tpu.memory_space<vmem>>, vector<2x1x32xf32>
    tpu.vector_store %arg7[%c0_51, %159, %c0_52], %158 {strides = array<i32>} : memref<2x8x32xf32, #tpu.memory_space<vmem>>, vector<2x1x32xf32>,
    %c4_i32 = arith.constant 4 : i32
    %cst_53 = arith.constant dense<0.000000e+00> : vector<2x96xf32>
    %161 = tpu.matmul %157, %1, %cst_53 {dimension_numbers = #tpu.dot_dimension_numbers<[1], [0], [0], [1], [0, 0, 1, 1], [], []>} : vector<2x32xf32>, vector<32x96xf32>, vector<2x96xf32> -> vector<2x96xf32>
    %162 = arith.index_cast %c4_i32 : i32 to index
    %c0_54 = arith.constant 0 : index
    %c0_55 = arith.constant 0 : index
    %163 = vector.load %arg8[%162, %c0_54, %c0_55] : memref<8x2x96xf32, #tpu.memory_space<vmem>>, vector<1x2x96xf32>
    %164 = vector.shape_cast %163 : vector<1x2x96xf32> to vector<2x96xf32>
    %165 = vector.extract_strided_slice %164 {offsets = [0, 0], sizes = [2, 32], strides = [1, 1]} : vector<2x96xf32> to vector<2x32xf32>
    %166 = vector.extract_strided_slice %161 {offsets = [0, 0], sizes = [2, 32], strides = [1, 1]} : vector<2x96xf32> to vector<2x32xf32>
    %167 = arith.addf %165, %166 : vector<2x32xf32>
    %168 = arith.negf %167 : vector<2x32xf32>
    %169 = math.exp %168 : vector<2x32xf32>
    %cst_56 = arith.constant 1.000000e+00 : f32
    %170 = vector.broadcast %cst_56 : f32 to vector<2x32xf32>
    %171 = arith.addf %170, %169 : vector<2x32xf32>
    %172 = arith.divf %170, %171 : vector<2x32xf32>
    %173 = vector.extract_strided_slice %164 {offsets = [0, 32], sizes = [2, 32], strides = [1, 1]} : vector<2x96xf32> to vector<2x32xf32>
    %174 = vector.extract_strided_slice %161 {offsets = [0, 32], sizes = [2, 32], strides = [1, 1]} : vector<2x96xf32> to vector<2x32xf32>
    %175 = arith.addf %173, %174 : vector<2x32xf32>
    %176 = arith.negf %175 : vector<2x32xf32>
    %177 = math.exp %176 : vector<2x32xf32>
    %cst_57 = arith.constant 1.000000e+00 : f32
    %178 = vector.broadcast %cst_57 : f32 to vector<2x32xf32>
    %179 = arith.addf %178, %177 : vector<2x32xf32>
    %180 = arith.divf %178, %179 : vector<2x32xf32>
    %181 = vector.extract_strided_slice %164 {offsets = [0, 64], sizes = [2, 32], strides = [1, 1]} : vector<2x96xf32> to vector<2x32xf32>
    %182 = vector.extract_strided_slice %161 {offsets = [0, 64], sizes = [2, 32], strides = [1, 1]} : vector<2x96xf32> to vector<2x32xf32>
    %183 = vector.broadcast %3 : vector<1x32xf32> to vector<2x32xf32>
    %184 = arith.addf %182, %183 : vector<2x32xf32>
    %185 = arith.mulf %172, %184 : vector<2x32xf32>
    %186 = arith.addf %181, %185 : vector<2x32xf32>
    %187 = math.tanh %186 : vector<2x32xf32>
    %cst_58 = arith.constant 1.000000e+00 : f32
    %188 = vector.broadcast %cst_58 : f32 to vector<2x32xf32>
    %189 = arith.subf %188, %180 : vector<2x32xf32>
    %190 = arith.mulf %189, %187 : vector<2x32xf32>
    %191 = arith.mulf %180, %157 : vector<2x32xf32>
    %192 = arith.addf %190, %191 : vector<2x32xf32>
    %193 = vector.shape_cast %192 : vector<2x32xf32> to vector<2x1x32xf32>
    %c0_59 = arith.constant 0 : index
    %194 = arith.index_cast %c4_i32 : i32 to index
    %c0_60 = arith.constant 0 : index
    %195 = vector.load %arg7[%c0_59, %194, %c0_60] : memref<2x8x32xf32, #tpu.memory_space<vmem>>, vector<2x1x32xf32>
    tpu.vector_store %arg7[%c0_59, %194, %c0_60], %193 {strides = array<i32>} : memref<2x8x32xf32, #tpu.memory_space<vmem>>, vector<2x1x32xf32>,
    %c5_i32 = arith.constant 5 : i32
    %cst_61 = arith.constant dense<0.000000e+00> : vector<2x96xf32>
    %196 = tpu.matmul %192, %1, %cst_61 {dimension_numbers = #tpu.dot_dimension_numbers<[1], [0], [0], [1], [0, 0, 1, 1], [], []>} : vector<2x32xf32>, vector<32x96xf32>, vector<2x96xf32> -> vector<2x96xf32>
    %197 = arith.index_cast %c5_i32 : i32 to index
    %c0_62 = arith.constant 0 : index
    %c0_63 = arith.constant 0 : index
    %198 = vector.load %arg8[%197, %c0_62, %c0_63] : memref<8x2x96xf32, #tpu.memory_space<vmem>>, vector<1x2x96xf32>
    %199 = vector.shape_cast %198 : vector<1x2x96xf32> to vector<2x96xf32>
    %200 = vector.extract_strided_slice %199 {offsets = [0, 0], sizes = [2, 32], strides = [1, 1]} : vector<2x96xf32> to vector<2x32xf32>
    %201 = vector.extract_strided_slice %196 {offsets = [0, 0], sizes = [2, 32], strides = [1, 1]} : vector<2x96xf32> to vector<2x32xf32>
    %202 = arith.addf %200, %201 : vector<2x32xf32>
    %203 = arith.negf %202 : vector<2x32xf32>
    %204 = math.exp %203 : vector<2x32xf32>
    %cst_64 = arith.constant 1.000000e+00 : f32
    %205 = vector.broadcast %cst_64 : f32 to vector<2x32xf32>
    %206 = arith.addf %205, %204 : vector<2x32xf32>
    %207 = arith.divf %205, %206 : vector<2x32xf32>
    %208 = vector.extract_strided_slice %199 {offsets = [0, 32], sizes = [2, 32], strides = [1, 1]} : vector<2x96xf32> to vector<2x32xf32>
    %209 = vector.extract_strided_slice %196 {offsets = [0, 32], sizes = [2, 32], strides = [1, 1]} : vector<2x96xf32> to vector<2x32xf32>
    %210 = arith.addf %208, %209 : vector<2x32xf32>
    %211 = arith.negf %210 : vector<2x32xf32>
    %212 = math.exp %211 : vector<2x32xf32>
    %cst_65 = arith.constant 1.000000e+00 : f32
    %213 = vector.broadcast %cst_65 : f32 to vector<2x32xf32>
    %214 = arith.addf %213, %212 : vector<2x32xf32>
    %215 = arith.divf %213, %214 : vector<2x32xf32>
    %216 = vector.extract_strided_slice %199 {offsets = [0, 64], sizes = [2, 32], strides = [1, 1]} : vector<2x96xf32> to vector<2x32xf32>
    %217 = vector.extract_strided_slice %196 {offsets = [0, 64], sizes = [2, 32], strides = [1, 1]} : vector<2x96xf32> to vector<2x32xf32>
    %218 = vector.broadcast %3 : vector<1x32xf32> to vector<2x32xf32>
    %219 = arith.addf %217, %218 : vector<2x32xf32>
    %220 = arith.mulf %207, %219 : vector<2x32xf32>
    %221 = arith.addf %216, %220 : vector<2x32xf32>
    %222 = math.tanh %221 : vector<2x32xf32>
    %cst_66 = arith.constant 1.000000e+00 : f32
    %223 = vector.broadcast %cst_66 : f32 to vector<2x32xf32>
    %224 = arith.subf %223, %215 : vector<2x32xf32>
    %225 = arith.mulf %224, %222 : vector<2x32xf32>
    %226 = arith.mulf %215, %192 : vector<2x32xf32>
    %227 = arith.addf %225, %226 : vector<2x32xf32>
    %228 = vector.shape_cast %227 : vector<2x32xf32> to vector<2x1x32xf32>
    %c0_67 = arith.constant 0 : index
    %229 = arith.index_cast %c5_i32 : i32 to index
    %c0_68 = arith.constant 0 : index
    %230 = vector.load %arg7[%c0_67, %229, %c0_68] : memref<2x8x32xf32, #tpu.memory_space<vmem>>, vector<2x1x32xf32>
    tpu.vector_store %arg7[%c0_67, %229, %c0_68], %228 {strides = array<i32>} : memref<2x8x32xf32, #tpu.memory_space<vmem>>, vector<2x1x32xf32>,
    %c6_i32 = arith.constant 6 : i32
    %cst_69 = arith.constant dense<0.000000e+00> : vector<2x96xf32>
    %231 = tpu.matmul %227, %1, %cst_69 {dimension_numbers = #tpu.dot_dimension_numbers<[1], [0], [0], [1], [0, 0, 1, 1], [], []>} : vector<2x32xf32>, vector<32x96xf32>, vector<2x96xf32> -> vector<2x96xf32>
    %232 = arith.index_cast %c6_i32 : i32 to index
    %c0_70 = arith.constant 0 : index
    %c0_71 = arith.constant 0 : index
    %233 = vector.load %arg8[%232, %c0_70, %c0_71] : memref<8x2x96xf32, #tpu.memory_space<vmem>>, vector<1x2x96xf32>
    %234 = vector.shape_cast %233 : vector<1x2x96xf32> to vector<2x96xf32>
    %235 = vector.extract_strided_slice %234 {offsets = [0, 0], sizes = [2, 32], strides = [1, 1]} : vector<2x96xf32> to vector<2x32xf32>
    %236 = vector.extract_strided_slice %231 {offsets = [0, 0], sizes = [2, 32], strides = [1, 1]} : vector<2x96xf32> to vector<2x32xf32>
    %237 = arith.addf %235, %236 : vector<2x32xf32>
    %238 = arith.negf %237 : vector<2x32xf32>
    %239 = math.exp %238 : vector<2x32xf32>
    %cst_72 = arith.constant 1.000000e+00 : f32
    %240 = vector.broadcast %cst_72 : f32 to vector<2x32xf32>
    %241 = arith.addf %240, %239 : vector<2x32xf32>
    %242 = arith.divf %240, %241 : vector<2x32xf32>
    %243 = vector.extract_strided_slice %234 {offsets = [0, 32], sizes = [2, 32], strides = [1, 1]} : vector<2x96xf32> to vector<2x32xf32>
    %244 = vector.extract_strided_slice %231 {offsets = [0, 32], sizes = [2, 32], strides = [1, 1]} : vector<2x96xf32> to vector<2x32xf32>
    %245 = arith.addf %243, %244 : vector<2x32xf32>
    %246 = arith.negf %245 : vector<2x32xf32>
    %247 = math.exp %246 : vector<2x32xf32>
    %cst_73 = arith.constant 1.000000e+00 : f32
    %248 = vector.broadcast %cst_73 : f32 to vector<2x32xf32>
    %249 = arith.addf %248, %247 : vector<2x32xf32>
    %250 = arith.divf %248, %249 : vector<2x32xf32>
    %251 = vector.extract_strided_slice %234 {offsets = [0, 64], sizes = [2, 32], strides = [1, 1]} : vector<2x96xf32> to vector<2x32xf32>
    %252 = vector.extract_strided_slice %231 {offsets = [0, 64], sizes = [2, 32], strides = [1, 1]} : vector<2x96xf32> to vector<2x32xf32>
    %253 = vector.broadcast %3 : vector<1x32xf32> to vector<2x32xf32>
    %254 = arith.addf %252, %253 : vector<2x32xf32>
    %255 = arith.mulf %242, %254 : vector<2x32xf32>
    %256 = arith.addf %251, %255 : vector<2x32xf32>
    %257 = math.tanh %256 : vector<2x32xf32>
    %cst_74 = arith.constant 1.000000e+00 : f32
    %258 = vector.broadcast %cst_74 : f32 to vector<2x32xf32>
    %259 = arith.subf %258, %250 : vector<2x32xf32>
    %260 = arith.mulf %259, %257 : vector<2x32xf32>
    %261 = arith.mulf %250, %227 : vector<2x32xf32>
    %262 = arith.addf %260, %261 : vector<2x32xf32>
    %263 = vector.shape_cast %262 : vector<2x32xf32> to vector<2x1x32xf32>
    %c0_75 = arith.constant 0 : index
    %264 = arith.index_cast %c6_i32 : i32 to index
    %c0_76 = arith.constant 0 : index
    %265 = vector.load %arg7[%c0_75, %264, %c0_76] : memref<2x8x32xf32, #tpu.memory_space<vmem>>, vector<2x1x32xf32>
    tpu.vector_store %arg7[%c0_75, %264, %c0_76], %263 {strides = array<i32>} : memref<2x8x32xf32, #tpu.memory_space<vmem>>, vector<2x1x32xf32>,
    %c7_i32 = arith.constant 7 : i32
    %cst_77 = arith.constant dense<0.000000e+00> : vector<2x96xf32>
    %266 = tpu.matmul %262, %1, %cst_77 {dimension_numbers = #tpu.dot_dimension_numbers<[1], [0], [0], [1], [0, 0, 1, 1], [], []>} : vector<2x32xf32>, vector<32x96xf32>, vector<2x96xf32> -> vector<2x96xf32>
    %267 = arith.index_cast %c7_i32 : i32 to index
    %c0_78 = arith.constant 0 : index
    %c0_79 = arith.constant 0 : index
    %268 = vector.load %arg8[%267, %c0_78, %c0_79] : memref<8x2x96xf32, #tpu.memory_space<vmem>>, vector<1x2x96xf32>
    %269 = vector.shape_cast %268 : vector<1x2x96xf32> to vector<2x96xf32>
    %270 = vector.extract_strided_slice %269 {offsets = [0, 0], sizes = [2, 32], strides = [1, 1]} : vector<2x96xf32> to vector<2x32xf32>
    %271 = vector.extract_strided_slice %266 {offsets = [0, 0], sizes = [2, 32], strides = [1, 1]} : vector<2x96xf32> to vector<2x32xf32>
    %272 = arith.addf %270, %271 : vector<2x32xf32>
    %273 = arith.negf %272 : vector<2x32xf32>
    %274 = math.exp %273 : vector<2x32xf32>
    %cst_80 = arith.constant 1.000000e+00 : f32
    %275 = vector.broadcast %cst_80 : f32 to vector<2x32xf32>
    %276 = arith.addf %275, %274 : vector<2x32xf32>
    %277 = arith.divf %275, %276 : vector<2x32xf32>
    %278 = vector.extract_strided_slice %269 {offsets = [0, 32], sizes = [2, 32], strides = [1, 1]} : vector<2x96xf32> to vector<2x32xf32>
    %279 = vector.extract_strided_slice %266 {offsets = [0, 32], sizes = [2, 32], strides = [1, 1]} : vector<2x96xf32> to vector<2x32xf32>
    %280 = arith.addf %278, %279 : vector<2x32xf32>
    %281 = arith.negf %280 : vector<2x32xf32>
    %282 = math.exp %281 : vector<2x32xf32>
    %cst_81 = arith.constant 1.000000e+00 : f32
    %283 = vector.broadcast %cst_81 : f32 to vector<2x32xf32>
    %284 = arith.addf %283, %282 : vector<2x32xf32>
    %285 = arith.divf %283, %284 : vector<2x32xf32>
    %286 = vector.extract_strided_slice %269 {offsets = [0, 64], sizes = [2, 32], strides = [1, 1]} : vector<2x96xf32> to vector<2x32xf32>
    %287 = vector.extract_strided_slice %266 {offsets = [0, 64], sizes = [2, 32], strides = [1, 1]} : vector<2x96xf32> to vector<2x32xf32>
    %288 = vector.broadcast %3 : vector<1x32xf32> to vector<2x32xf32>
    %289 = arith.addf %287, %288 : vector<2x32xf32>
    %290 = arith.mulf %277, %289 : vector<2x32xf32>
    %291 = arith.addf %286, %290 : vector<2x32xf32>
    %292 = math.tanh %291 : vector<2x32xf32>
    %cst_82 = arith.constant 1.000000e+00 : f32
    %293 = vector.broadcast %cst_82 : f32 to vector<2x32xf32>
    %294 = arith.subf %293, %285 : vector<2x32xf32>
    %295 = arith.mulf %294, %292 : vector<2x32xf32>
    %296 = arith.mulf %285, %262 : vector<2x32xf32>
    %297 = arith.addf %295, %296 : vector<2x32xf32>
    %298 = vector.shape_cast %297 : vector<2x32xf32> to vector<2x1x32xf32>
    %c0_83 = arith.constant 0 : index
    %299 = arith.index_cast %c7_i32 : i32 to index
    %c0_84 = arith.constant 0 : index
    %300 = vector.load %arg7[%c0_83, %299, %c0_84] : memref<2x8x32xf32, #tpu.memory_space<vmem>>, vector<2x1x32xf32>
    tpu.vector_store %arg7[%c0_83, %299, %c0_84], %298 {strides = array<i32>} : memref<2x8x32xf32, #tpu.memory_space<vmem>>, vector<2x1x32xf32>,
    %c8_i32 = arith.constant 8 : i32
    return
  }
  func.func @transform_0(%arg0: i32) -> (i32, i32, i32) {
    %c0_i32 = arith.constant 0 : i32
    %c0_i32_0 = arith.constant 0 : i32
    %c0_i32_1 = arith.constant 0 : i32
    return %arg0, %c0_i32, %c0_i32_0 : i32, i32, i32
  }
  func.func @transform_1(%arg0: i32) -> (i32, i32) {
    %c0_i32 = arith.constant 0 : i32
    %c0_i32_0 = arith.constant 0 : i32
    %c0_i32_1 = arith.constant 0 : i32
    return %c0_i32, %c0_i32_0 : i32, i32
  }
  func.func @transform_2(%arg0: i32) -> (i32, i32) {
    %c0_i32 = arith.constant 0 : i32
    %c0_i32_0 = arith.constant 0 : i32
    %c0_i32_1 = arith.constant 0 : i32
    return %c0_i32, %c0_i32_0 : i32, i32
  }
  func.func @transform_3(%arg0: i32) -> (i32, i32) {
    %c0_i32 = arith.constant 0 : i32
    %c0_i32_0 = arith.constant 0 : i32
    %c0_i32_1 = arith.constant 0 : i32
    return %c0_i32, %c0_i32_0 : i32, i32
  }
  func.func @transform_4(%arg0: i32) -> (i32, i32) {
    %c0_i32 = arith.constant 0 : i32
    %c0_i32_0 = arith.constant 0 : i32
    %c0_i32_1 = arith.constant 0 : i32
    return %c0_i32, %c0_i32_0 : i32, i32
  }
  func.func @transform_5(%arg0: i32) -> (i32, i32) {
    %c0_i32 = arith.constant 0 : i32
    %c0_i32_0 = arith.constant 0 : i32
    return %arg0, %c0_i32 : i32, i32
  }
  func.func @transform_6(%arg0: i32) -> (i32, i32, i32) {
    %c0_i32 = arith.constant 0 : i32
    %c0_i32_0 = arith.constant 0 : i32
    %c0_i32_1 = arith.constant 0 : i32
    return %arg0, %c0_i32, %c0_i32_0 : i32, i32, i32
  }
}

</mosaic_0001>

<bundles_post_ra>
// kernel: tpu_custom_call.1
= control target key start
LH: loop header
LB: loop body
LE: loop exit
PB: predicated region body
PF: predicated region fallthrough
CT: control target
= control target key end

     0   :  { %11 = vsyncpa [#allocation4], 0  ;;  %s1271_s0 = inlined_call_operand.hbm [shape: f32[2,8,16], index: 0, kind: input, shape index: {}]   ;;  %s1272_s1 = inlined_call_operand.hbm [shape: f32[16,96], index: 1, kind: input, shape index: {}]   ;;  %s1273_s2 = inlined_call_operand.hbm [shape: f32[32,96], index: 2, kind: input, shape index: {}]   ;;  %s1274_s3 = inlined_call_operand.vmem [shape: f32[1,96], index: 3, kind: input, shape index: {}]   ;;  %s1275_s4 = inlined_call_operand.hbm [shape: f32[1,32], index: 4, kind: input, shape index: {}]   ;;  %s1276_s5 = inlined_call_operand.vmem [shape: f32[2,32], index: 5, kind: input, shape index: {}]   ;;  %s1277_s6 = inlined_call_operand.hbm [shape: f32[2,8,32], index: 6, kind: output, shape index: {}]  }
   0x1   :  { %12 = vsyncpa [#allocation7], 0 }
   0x2   :  { %13 = vsyncpa [#allocation10], 0 }
   0x3   :  { %14 = vsyncpa [#allocation5], 0  ;;  %s32_s23 = sshll.u32 %s1272_s1, 4  ;;  %s1053_s24 = smov [#allocation6]   ;;  %s33_s23 = int_to_ptr.hbm [resolvable:$true] %s32_s23 }
   0x4   :  { %s34_s25 = sshll.u32 %s1053_s24, 4  ;;  %s19_s28 = sshll.u32 %s1271_s0, 4  ;;  %s35_s25 = int_to_ptr.vmem [resolvable:$true] %s34_s25  ;;  %s20_s28 = int_to_ptr.hbm [resolvable:$true] %s19_s28 }
   0x5   :  { %s1054_s29 = smov 128   ;;  %s1055_s30 = smov 8  }
   0x6   :  { %40 = dma.hbm_to_vmem [thread:$0]  %s33_s23, 256, %s35_s25, [#allocation7], %s1054_s29, %s1054_s29, %s1055_s30  }
   0x7   :  { %s1056_s7 = smov [#allocation3]   ;;  %s45_s1 = sshll.u32 %s1273_s2, 4  ;;  %s46_s1 = int_to_ptr.hbm [resolvable:$true] %s45_s1 }
   0x8   :  { %s21_s8 = sshll.u32 %s1056_s7, 4  ;;  %s61_s12 = sshll.u32 %s1275_s4, 4  ;;  %s22_s8 = int_to_ptr.vmem [resolvable:$true] %s21_s8  ;;  %s62_s12 = int_to_ptr.hbm [resolvable:$true] %s61_s12 }
   0x9   :  { %27 = dma.hbm_to_vmem [thread:$0]  %s20_s28, 256, %s22_s8, [#allocation4], %s1054_s29, %s1054_s29, %s1055_s30  }
   0xa   :  { %s1057_s13 = smov [#allocation8]   ;;  %s1058_s15 = smov [#allocation9]  }
   0xb   :  { %s47_s14 = sshll.u32 %s1057_s13, 4  ;;  %s63_s2 = sshll.u32 %s1058_s15, 4  ;;  %s48_s14 = int_to_ptr.vmem [resolvable:$true] %s47_s14  ;;  %s64_s2 = int_to_ptr.vmem [resolvable:$true] %s63_s2 }
   0xc   :  { %53 = dma.hbm_to_vmem [thread:$0]  %s46_s1, 512, %s48_s14, [#allocation7], %s1054_s29, %s1054_s29, %s1055_s30  }
   0xd   :  { %66 = dma.hbm_to_vmem [thread:$0]  %s62_s12, 16, %s64_s2, [#allocation10]  }
   0xe   :  { %1045 = dma.done.wait [#allocation4], 256  }
   0xf   :  { %1046 = vsyncadd [#allocation4], 4294967040 }
  0x10   :  { %1047 = dma.done.wait [#allocation7], 768  }
  0x11   :  { %1048 = vsyncadd [#allocation7], 4294966528 }
  0x12   :  { %1049 = dma.done.wait [#allocation10], 16  }
  0x13   :  { %1050 = vsyncadd [#allocation10], 4294967280  ;;  %v86_v0 = vld [vmem:[#allocation6 + $0x8] sm:$0xff]  ;;  %v85_v2 = vld [vmem:[#allocation6] sm:$0xff]  ;;  %vm97_vm0 = vcmask 130048   ;;  %s1059_s17 = smov 64  }
  0x14   :  { %v90_v1 = vld [vmem:[#allocation8 + $0x18] sm:$0xff]  ;;  %115 = vmatpush.msra.mxu0 %v86_v0  ;;  %164 = vmatpush.msra.mxu1 %v86_v0  ;;  %v89_v3 = vld [vmem:[#allocation8 + $0x10] sm:$0xff]  ;;  %v93_v4 = vld [vmem:[#allocation3] sm:$0xff]  ;;  %vm194_vm1 = vcmask 261120   ;;  %s1060_s18 = smov 32   ;;  %vm136_vm2 = vcmask 778240  }
  0x15   :  { %210 = vmatpush.msra.mxu2 %v90_v1  ;;  %v146_v5 = vld [vmem:[#allocation3 + $0x8] sm:$0xff]  ;;  %296 = vmatpush.msra.mxu3 %v90_v1  ;;  %v875_v7 = vld [vmem:[#allocation9] ss:$0 sm:$0xff]  ;;  %v193_v9 = vld [vmem:[%s1276_s5] sm:$0x3]  ;;  %s1062_s20 = smov [#allocation11]  }
  0x16   :  { %v88_v6 = vld [vmem:[#allocation8 + $0x8] sm:$0xff]  ;;  %116 = vmatpush.msra.mxu0 %v85_v2  ;;  %165 = vmatpush.msra.mxu1 %v85_v2  ;;  %v87_v8 = vld [vmem:[#allocation8] sm:$0xff]  ;;  %v876_v10 = vld [vmem:[%s1274_s3] ss:$0 sm:$0xff]  ;;  %s1061_s3 = smov 96   ;;  %s830_s21 = sshll.u32 %s1062_s20, 4  ;;  %s831_s21 = int_to_ptr.vmem [resolvable:$true] %s830_s21 }
  0x17   :  { %211 = vmatpush.msra.mxu2 %v89_v3  ;;  %847 = vmatmul.msk.f32.vlgmr.msra.gmra.mxu0 %vm97_vm0, %v93_v4  ;;  %s832_s24 = sshll.u32 %s1277_s6, 4  ;;  %s833_s24 = int_to_ptr.hbm [resolvable:$true] %s832_s24 }
  0x18   :  { %848 = vmatmul.msk.f32.vlgmr.msra.gmra.mxu1 %vm97_vm0, %v146_v5  ;;  %241 = vrot.lane.b32.xlu0 %v875_v7, %s1059_s17 }
  0x19   :  { %212 = vmatpush.msra.mxu2 %v88_v6  ;;  %262 = vrot.lane.b32.xlu2 %v193_v9, %s1060_s18 }
  0x1a   :  { %297 = vmatpush.msra.mxu3 %v89_v3  ;;  %374 = vmatpush.msrb.mxu0 %v90_v1 }
  0x1b   :  { %213 = vmatpush.msra.mxu2 %v87_v8  ;;  %452 = vmatpush.msrb.mxu1 %v90_v1 }
  0x1c   :  { %849 = vmatmul.msk.f32.vlgmr.msra.gmra.mxu2 %vm194_vm1, %v193_v9  ;;  %298 = vmatpush.msra.mxu3 %v88_v6 }
  0x1d   :  { %375 = vmatpush.msrb.mxu0 %v89_v3  ;;  %453 = vmatpush.msrb.mxu1 %v89_v3 }
  0x1e   :  { %299 = vmatpush.msra.mxu3 %v87_v8  ;;  %530 = vmatpush.msrb.mxu2 %v90_v1 }
  0x1f   :  { %376 = vmatpush.msrb.mxu0 %v88_v6  ;;  %454 = vmatpush.msrb.mxu1 %v88_v6 }
  0x20   :  { %531 = vmatpush.msrb.mxu2 %v89_v3  ;;  %608 = vmatpush.msrb.mxu3 %v90_v1 }
  0x21   :  { %377 = vmatpush.msrb.mxu0 %v87_v8  ;;  %455 = vmatpush.msrb.mxu1 %v87_v8 }
  0x22   :  { %532 = vmatpush.msrb.mxu2 %v88_v6  ;;  %609 = vmatpush.msrb.mxu3 %v89_v3 }
  0x23   :  { %686 = vmatpush.msra.mxu0 %v90_v1  ;;  %764 = vmatpush.msra.mxu1 %v90_v1 }
  0x24   :  { %533 = vmatpush.msrb.mxu2 %v87_v8  ;;  %610 = vmatpush.msrb.mxu3 %v88_v6 }
  0x25   :  { %687 = vmatpush.msra.mxu0 %v89_v3  ;;  %765 = vmatpush.msra.mxu1 %v89_v3 }
  0x26   :  { %611 = vmatpush.msrb.mxu3 %v87_v8 }
  0x27   :  { %688 = vmatpush.msra.mxu0 %v88_v6  ;;  %766 = vmatpush.msra.mxu1 %v88_v6 }
  0x29   :  { %689 = vmatpush.msra.mxu0 %v87_v8  ;;  %767 = vmatpush.msra.mxu1 %v87_v8 }
  0x73   :  { %v263_v52 = vpop.permute.xlu2 %262 }
  0x8a   :  { %v1134_v24 = vpop.permute.xlu0 %241 }
  0x94   :  { %v118_v11 = vpop.f32.mrf.mxu0 }
  0x95   :  { %v119_v12 = vadd.f32 %v876_v10, %v118_v11  ;;  %v167_v13 = vpop.f32.mrf.mxu1 }
  0x96   :  { %v168_v14 = vadd.f32 %v876_v10, %v167_v13 }
  0x97   :  { %v122_v15 = vrot.slane %v119_v12, 1  ;;  %v123_v16 = vrot.slane %v119_v12, 2  ;;  %v124_v17 = vrot.slane %v119_v12, 3  ;;  %137 = vst.msk [vmem:[#allocation2] sm:$0x1] %vm136_vm2, %v119_v12  ;;  %v125_v18 = vrot.slane %v119_v12, 4 }
  0x98   :  { %185 = vst.msk [vmem:[#allocation2 + $0x1] sm:$0x1] %vm136_vm2, %v168_v14  ;;  %v126_v19 = vrot.slane %v119_v12, 5  ;;  %v127_v20 = vrot.slane %v119_v12, 6  ;;  %v128_v21 = vrot.slane %v119_v12, 7  ;;  %v171_v22 = vrot.slane %v168_v14, 1 }
  0x99   :  { %138 = vst.msk [vmem:[#allocation2 + $0x2] sm:$0x1] %vm136_vm2, %v122_v15  ;;  %v172_v23 = vrot.slane %v168_v14, 2  ;;  %v173_v25 = vrot.slane %v168_v14, 3  ;;  %v174_v26 = vrot.slane %v168_v14, 4  ;;  %v175_v28 = vrot.slane %v168_v14, 5 }
  0x9a   :  { %139 = vst.msk [vmem:[#allocation2 + $0x4] sm:$0x1] %vm136_vm2, %v123_v16  ;;  %v176_v30 = vrot.slane %v168_v14, 6  ;;  %v177_v31 = vrot.slane %v168_v14, 7 }
  0x9b   :  { %140 = vst.msk [vmem:[#allocation2 + $0x6] sm:$0x1] %vm136_vm2, %v124_v17 }
  0x9c   :  { %141 = vst.msk [vmem:[#allocation2 + $0x8] sm:$0x1] %vm136_vm2, %v125_v18 }
  0x9d   :  { %142 = vst.msk [vmem:[#allocation2 + $0xa] sm:$0x1] %vm136_vm2, %v126_v19 }
  0x9e   :  { %143 = vst.msk [vmem:[#allocation2 + $0xc] sm:$0x1] %vm136_vm2, %v127_v20 }
  0x9f   :  { %144 = vst.msk [vmem:[#allocation2 + $0xe] sm:$0x1] %vm136_vm2, %v128_v21  ;;  %v215_v27 = vpop.f32.mrf.mxu2  ;;  %v218_v32 = vld [vmem:[#allocation2] sm:$0x3] }
  0xa0   :  { %186 = vst.msk [vmem:[#allocation2 + $0x3] sm:$0x1] %vm136_vm2, %v171_v22  ;;  %v244_v29 = vadd.f32 %v1134_v24, %v215_v27  ;;  %v219_v33 = vadd.f32 %v218_v32, %v215_v27 }
  0xa1   :  { %187 = vst.msk [vmem:[#allocation2 + $0x5] sm:$0x1] %vm136_vm2, %v172_v23 }
  0xa2   :  { %188 = vst.msk [vmem:[#allocation2 + $0x7] sm:$0x1] %vm136_vm2, %v173_v25  ;;  %246 = vrot.lane.b32.xlu0 %v244_v29, %s1059_s17  ;;  %v850_v34 = vmul.f32 -1.442695, %v219_v33 }
  0xa3   :  { %189 = vst.msk [vmem:[#allocation2 + $0x9] sm:$0x1] %vm136_vm2, %v174_v26 }
  0xa4   :  { %190 = vst.msk [vmem:[#allocation2 + $0xb] sm:$0x1] %vm136_vm2, %v175_v28  ;;  %877 = vpow2.f32 %v850_v34 }
  0xa5   :  { %191 = vst.msk [vmem:[#allocation2 + $0xd] sm:$0x1] %vm136_vm2, %v176_v30 }
  0xa6   :  { %192 = vst.msk [vmem:[#allocation2 + $0xf] sm:$0x1] %vm136_vm2, %v177_v31 }
  0xa7   :  { %v305_v61 = vld [vmem:[#allocation2 + $0x2] sm:$0x3] }
  0xa8   :  { %v383_v26 = vld [vmem:[#allocation2 + $0x4] sm:$0x3] }
  0xaa   :  { %v878_v35 = vpop.eup %877 }
  0xab   :  { %v223_v36 = vadd.f32 1.0, %v878_v35 }
  0xad   :  { %879 = vrcp.f32 %v223_v36  ;;  %v235_v42 = vand.u32 2147483648, %v223_v36  ;;  %vm229_vm4 = vweird.f32 %v223_v36  ;;  %v233_v43 = vand.u32 2147483647, %v223_v36 }
  0xaf   :  { %v236_v45 = vor.u32 1.1754944e-38, %v235_v42  ;;  %vm234_vm6 = vcmp.eq.f32.partialorder %v233_v43, 8.507059e+37 }
  0xb3   :  { %v880_v37 = vpop.eup %879 }
  0xb4   :  { %v225_v38 = vmul.f32 %v880_v37, %v223_v36  ;;  %vm230_vm3 = vweird.f32 %v880_v37 }
  0xb5   :  { %vm231_vm5 = vmor %vm229_vm4, %vm230_vm3 }
  0xb6   :  { %v226_v39 = vsub.f32 1.0, %v225_v38 }
  0xb8   :  { %v227_v40 = vmul.f32 %v880_v37, %v226_v39 }
  0xba   :  { %v228_v41 = vadd.f32 %v880_v37, %v227_v40 }
  0xbc   :  { %v232_v44 = vsel %vm231_vm5, %v880_v37, %v228_v41 }
  0xbd   :  { %v237_v46 = vsel %vm234_vm6, %v236_v45, %v232_v44 }
  0xbe   :  { %v256_v53 = vsub.f32 1.0, %v237_v46  ;;  %v265_v55 = vmul.f32 %v263_v52, %v237_v46 }
 0x114   :  { %v247_v47 = vpop.permute.xlu0 %246 }
 0x115   :  { %v249_v48 = vmul.f32 %v247_v47, %v237_v46 }
 0x117   :  { %251 = vrot.lane.b32.xlu1 %v249_v48, %s1059_s17 }
 0x189   :  { %v252_v49 = vpop.permute.xlu1 %251 }
 0x18a   :  { %v254_v50 = vadd.f32 %v252_v49, %v218_v32 }
 0x18c   :  { %881 = vtanh.f32 %v254_v50 }
 0x192   :  { %v882_v51 = vpop.eup %881 }
 0x193   :  { %258 = vrot.lane.b32.xlu1 %v882_v51, %s1061_s3 }
 0x205   :  { %v259_v54 = vpop.permute.xlu1 %258 }
 0x206   :  { %v261_v56 = vmul.f32 %v259_v54, %v256_v53  ;;  %v461_v54 = vld [vmem:[#allocation2 + $0x6] sm:$0x3] }
 0x208   :  { %v1149_v57 = vadd.f32 %v265_v55, %v261_v56 }
 0x20a   :  { %280 = vrot.lane.b32.xlu2 %v1149_v57, %s1061_s3 }
 0x264   :  { %v281_v58 = vpop.permute.xlu2 %280 }
 0x265   :  { %851 = vmatmul.msk.f32.vlgmr.msra.gmra.mxu3 %vm194_vm1, %v281_v58 }
 0x2e8   :  { %v301_v59 = vpop.f32.mrf.mxu3 }
 0x2e9   :  { %v326_v60 = vadd.f32 %v301_v59, %v1134_v24  ;;  %v306_v62 = vadd.f32 %v305_v61, %v301_v59 }
 0x2eb   :  { %328 = vrot.lane.b32.xlu0 %v326_v60, %s1059_s17  ;;  %v852_v63 = vmul.f32 -1.442695, %v306_v62 }
 0x2ed   :  { %883 = vpow2.f32 %v852_v63 }
 0x2f3   :  { %v884_v0 = vpop.eup %883 }
 0x2f4   :  { %v310_v1 = vadd.f32 1.0, %v884_v0 }
 0x2f6   :  { %885 = vrcp.f32 %v310_v1  ;;  %v322_v7 = vand.u32 2147483648, %v310_v1  ;;  %vm316_vm8 = vweird.f32 %v310_v1  ;;  %v320_v8 = vand.u32 2147483647, %v310_v1 }
 0x2f8   :  { %v323_v10 = vor.u32 1.1754944e-38, %v322_v7  ;;  %vm321_vm10 = vcmp.eq.f32.partialorder %v320_v8, 8.507059e+37 }
 0x2fc   :  { %v886_v2 = vpop.eup %885 }
 0x2fd   :  { %v312_v3 = vmul.f32 %v886_v2, %v310_v1  ;;  %vm317_vm7 = vweird.f32 %v886_v2 }
 0x2fe   :  { %vm318_vm9 = vmor %vm316_vm8, %vm317_vm7 }
 0x2ff   :  { %v313_v4 = vsub.f32 1.0, %v312_v3 }
 0x301   :  { %v314_v5 = vmul.f32 %v886_v2, %v313_v4 }
 0x303   :  { %v315_v6 = vadd.f32 %v886_v2, %v314_v5 }
 0x305   :  { %v319_v9 = vsel %vm318_vm9, %v886_v2, %v315_v6 }
 0x306   :  { %v324_v12 = vsel %vm321_vm10, %v323_v10, %v319_v9 }
 0x307   :  { %v338_v17 = vsub.f32 1.0, %v324_v12  ;;  %v344_v19 = vmul.f32 %v324_v12, %v1149_v57 }
 0x35d   :  { %v329_v11 = vpop.permute.xlu0 %328 }
 0x35e   :  { %v331_v13 = vmul.f32 %v329_v11, %v324_v12 }
 0x360   :  { %333 = vrot.lane.b32.xlu1 %v331_v13, %s1059_s17 }
 0x3d2   :  { %v334_v14 = vpop.permute.xlu1 %333 }
 0x3d3   :  { %v336_v15 = vadd.f32 %v334_v14, %v305_v61 }
 0x3d5   :  { %887 = vtanh.f32 %v336_v15 }
 0x3db   :  { %v888_v16 = vpop.eup %887 }
 0x3dc   :  { %340 = vrot.lane.b32.xlu2 %v888_v16, %s1061_s3 }
 0x436   :  { %v341_v18 = vpop.permute.xlu2 %340 }
 0x437   :  { %v343_v20 = vmul.f32 %v341_v18, %v338_v17 }
 0x439   :  { %v1159_v21 = vadd.f32 %v344_v19, %v343_v20  ;;  %v539_v19 = vld [vmem:[#allocation2 + $0x8] sm:$0x3] }
 0x43b   :  { %358 = vrot.lane.b32.xlu0 %v1159_v21, %s1061_s3 }
 0x4ad   :  { %v359_v22 = vpop.permute.xlu0 %358 }
 0x4ae   :  { %853 = vmatmul.msk.f32.vlgmr.msrb.gmra.mxu0 %vm194_vm1, %v359_v22 }
 0x52b   :  { %v379_v23 = vpop.f32.mrf.mxu0 }
 0x52c   :  { %v404_v25 = vadd.f32 %v379_v23, %v1134_v24  ;;  %v384_v27 = vadd.f32 %v383_v26, %v379_v23 }
 0x52e   :  { %406 = vrot.lane.b32.xlu1 %v404_v25, %s1059_s17  ;;  %v854_v28 = vmul.f32 -1.442695, %v384_v27 }
 0x530   :  { %889 = vpow2.f32 %v854_v28 }
 0x536   :  { %v890_v29 = vpop.eup %889 }
 0x537   :  { %v388_v30 = vadd.f32 1.0, %v890_v29 }
 0x539   :  { %891 = vrcp.f32 %v388_v30  ;;  %v400_v36 = vand.u32 2147483648, %v388_v30  ;;  %vm394_vm12 = vweird.f32 %v388_v30  ;;  %v398_v37 = vand.u32 2147483647, %v388_v30 }
 0x53b   :  { %v401_v39 = vor.u32 1.1754944e-38, %v400_v36  ;;  %vm399_vm14 = vcmp.eq.f32.partialorder %v398_v37, 8.507059e+37 }
 0x53f   :  { %v892_v31 = vpop.eup %891 }
 0x540   :  { %v390_v32 = vmul.f32 %v892_v31, %v388_v30  ;;  %vm395_vm11 = vweird.f32 %v892_v31 }
 0x541   :  { %vm396_vm13 = vmor %vm394_vm12, %vm395_vm11 }
 0x542   :  { %v391_v33 = vsub.f32 1.0, %v390_v32 }
 0x544   :  { %v392_v34 = vmul.f32 %v892_v31, %v391_v33 }
 0x546   :  { %v393_v35 = vadd.f32 %v892_v31, %v392_v34 }
 0x548   :  { %v397_v38 = vsel %vm396_vm13, %v892_v31, %v393_v35 }
 0x549   :  { %v402_v41 = vsel %vm399_vm14, %v401_v39, %v397_v38 }
 0x54a   :  { %v416_v46 = vsub.f32 1.0, %v402_v41  ;;  %v422_v48 = vmul.f32 %v402_v41, %v1159_v21 }
 0x5a0   :  { %v407_v40 = vpop.permute.xlu1 %406 }
 0x5a1   :  { %v409_v42 = vmul.f32 %v407_v40, %v402_v41 }
 0x5a3   :  { %411 = vrot.lane.b32.xlu2 %v409_v42, %s1059_s17 }
 0x5fd   :  { %v412_v43 = vpop.permute.xlu2 %411 }
 0x5fe   :  { %v414_v44 = vadd.f32 %v412_v43, %v383_v26 }
 0x600   :  { %893 = vtanh.f32 %v414_v44 }
 0x606   :  { %v894_v45 = vpop.eup %893 }
 0x607   :  { %418 = vrot.lane.b32.xlu0 %v894_v45, %s1061_s3 }
 0x679   :  { %v419_v47 = vpop.permute.xlu0 %418 }
 0x67a   :  { %v421_v49 = vmul.f32 %v419_v47, %v416_v46 }
 0x67c   :  { %v1169_v50 = vadd.f32 %v422_v48, %v421_v49  ;;  %v617_v49 = vld [vmem:[#allocation2 + $0xa] sm:$0x3] }
 0x67e   :  { %436 = vrot.lane.b32.xlu1 %v1169_v50, %s1061_s3 }
 0x6f0   :  { %v437_v51 = vpop.permute.xlu1 %436 }
 0x6f1   :  { %855 = vmatmul.msk.f32.vlgmr.msrb.gmra.mxu1 %vm194_vm1, %v437_v51 }
 0x76e   :  { %v457_v52 = vpop.f32.mrf.mxu1 }
 0x76f   :  { %v482_v53 = vadd.f32 %v457_v52, %v1134_v24  ;;  %v462_v55 = vadd.f32 %v461_v54, %v457_v52 }
 0x771   :  { %484 = vrot.lane.b32.xlu2 %v482_v53, %s1059_s17  ;;  %v856_v56 = vmul.f32 -1.442695, %v462_v55 }
 0x773   :  { %895 = vpow2.f32 %v856_v56 }
 0x779   :  { %v896_v58 = vpop.eup %895 }
 0x77a   :  { %v466_v59 = vadd.f32 1.0, %v896_v58 }
 0x77c   :  { %897 = vrcp.f32 %v466_v59  ;;  %v478_v1 = vand.u32 2147483648, %v466_v59  ;;  %vm472_vm0 = vweird.f32 %v466_v59  ;;  %v476_v2 = vand.u32 2147483647, %v466_v59 }
 0x77e   :  { %v479_v4 = vor.u32 1.1754944e-38, %v478_v1  ;;  %vm477_vm3 = vcmp.eq.f32.partialorder %v476_v2, 8.507059e+37 }
 0x782   :  { %v898_v60 = vpop.eup %897 }
 0x783   :  { %v468_v61 = vmul.f32 %v898_v60, %v466_v59  ;;  %vm473_vm15 = vweird.f32 %v898_v60 }
 0x784   :  { %vm474_vm2 = vmor %vm472_vm0, %vm473_vm15 }
 0x785   :  { %v469_v62 = vsub.f32 1.0, %v468_v61 }
 0x787   :  { %v470_v63 = vmul.f32 %v898_v60, %v469_v62 }
 0x789   :  { %v471_v0 = vadd.f32 %v898_v60, %v470_v63 }
 0x78b   :  { %v475_v3 = vsel %vm474_vm2, %v898_v60, %v471_v0 }
 0x78c   :  { %v480_v6 = vsel %vm477_vm3, %v479_v4, %v475_v3 }
 0x78d   :  { %v494_v11 = vsub.f32 1.0, %v480_v6  ;;  %v500_v13 = vmul.f32 %v480_v6, %v1169_v50 }
 0x7cb   :  { %v485_v5 = vpop.permute.xlu2 %484 }
 0x7cc   :  { %v487_v7 = vmul.f32 %v485_v5, %v480_v6 }
 0x7ce   :  { %489 = vrot.lane.b32.xlu0 %v487_v7, %s1059_s17 }
 0x840   :  { %v490_v8 = vpop.permute.xlu0 %489 }
 0x841   :  { %v492_v9 = vadd.f32 %v490_v8, %v461_v54 }
 0x843   :  { %899 = vtanh.f32 %v492_v9 }
 0x849   :  { %v900_v10 = vpop.eup %899 }
 0x84a   :  { %496 = vrot.lane.b32.xlu1 %v900_v10, %s1061_s3 }
 0x8bc   :  { %v497_v12 = vpop.permute.xlu1 %496 }
 0x8bd   :  { %v499_v14 = vmul.f32 %v497_v12, %v494_v11 }
 0x8bf   :  { %v1179_v15 = vadd.f32 %v500_v13, %v499_v14 }
 0x8c1   :  { %514 = vrot.lane.b32.xlu2 %v1179_v15, %s1061_s3 }
 0x91b   :  { %v515_v16 = vpop.permute.xlu2 %514 }
 0x91c   :  { %857 = vmatmul.msk.f32.vlgmr.msrb.gmra.mxu2 %vm194_vm1, %v515_v16  ;;  %v695_v16 = vld [vmem:[#allocation2 + $0xc] sm:$0x3] }
 0x99f   :  { %v535_v17 = vpop.f32.mrf.mxu2 }
 0x9a0   :  { %v560_v18 = vadd.f32 %v535_v17, %v1134_v24  ;;  %v540_v20 = vadd.f32 %v539_v19, %v535_v17 }
 0x9a2   :  { %562 = vrot.lane.b32.xlu0 %v560_v18, %s1059_s17  ;;  %v858_v22 = vmul.f32 -1.442695, %v540_v20 }
 0x9a4   :  { %901 = vpow2.f32 %v858_v22 }
 0x9aa   :  { %v902_v23 = vpop.eup %901 }
 0x9ab   :  { %v544_v25 = vadd.f32 1.0, %v902_v23 }
 0x9ad   :  { %903 = vrcp.f32 %v544_v25  ;;  %v556_v31 = vand.u32 2147483648, %v544_v25  ;;  %vm550_vm5 = vweird.f32 %v544_v25  ;;  %v554_v32 = vand.u32 2147483647, %v544_v25 }
 0x9af   :  { %v557_v34 = vor.u32 1.1754944e-38, %v556_v31  ;;  %vm555_vm7 = vcmp.eq.f32.partialorder %v554_v32, 8.507059e+37 }
 0x9b3   :  { %v904_v26 = vpop.eup %903 }
 0x9b4   :  { %v546_v27 = vmul.f32 %v904_v26, %v544_v25  ;;  %vm551_vm4 = vweird.f32 %v904_v26 }
 0x9b5   :  { %vm552_vm6 = vmor %vm550_vm5, %vm551_vm4  ;;  %vm277_vm4 = vcmask 253952  }
 0x9b6   :  { %v547_v28 = vsub.f32 1.0, %v546_v27 }
 0x9b8   :  { %v548_v29 = vmul.f32 %v904_v26, %v547_v28 }
 0x9ba   :  { %v549_v30 = vadd.f32 %v904_v26, %v548_v29 }
 0x9bc   :  { %v553_v33 = vsel %vm552_vm6, %v904_v26, %v549_v30 }
 0x9bd   :  { %v558_v36 = vsel %vm555_vm7, %v557_v34, %v553_v33 }
 0x9be   :  { %v572_v41 = vsub.f32 1.0, %v558_v36  ;;  %v578_v43 = vmul.f32 %v558_v36, %v1179_v15 }
 0xa14   :  { %v563_v35 = vpop.permute.xlu0 %562 }
 0xa15   :  { %v565_v37 = vmul.f32 %v563_v35, %v558_v36 }
 0xa17   :  { %567 = vrot.lane.b32.xlu1 %v565_v37, %s1059_s17 }
 0xa89   :  { %v568_v38 = vpop.permute.xlu1 %567 }
 0xa8a   :  { %v570_v39 = vadd.f32 %v568_v38, %v539_v19 }
 0xa8c   :  { %905 = vtanh.f32 %v570_v39 }
 0xa92   :  { %v906_v40 = vpop.eup %905 }
 0xa93   :  { %574 = vrot.lane.b32.xlu2 %v906_v40, %s1061_s3 }
 0xaed   :  { %v575_v42 = vpop.permute.xlu2 %574 }
 0xaee   :  { %v577_v44 = vmul.f32 %v575_v42, %v572_v41 }
 0xaf0   :  { %v1189_v45 = vadd.f32 %v578_v43, %v577_v44 }
 0xaf2   :  { %592 = vrot.lane.b32.xlu0 %v1189_v45, %s1061_s3 }
 0xb64   :  { %v593_v46 = vpop.permute.xlu0 %592 }
 0xb65   :  { %859 = vmatmul.msk.f32.vlgmr.msrb.gmra.mxu3 %vm194_vm1, %v593_v46 }
 0xbe8   :  { %v613_v47 = vpop.f32.mrf.mxu3 }
 0xbe9   :  { %v638_v48 = vadd.f32 %v613_v47, %v1134_v24  ;;  %v618_v51 = vadd.f32 %v617_v49, %v613_v47  ;;  %v269_v47 = vperm.slane %v1149_v57, 0 }
 0xbeb   :  { %640 = vrot.lane.b32.xlu1 %v638_v48, %s1059_s17  ;;  %v860_v52 = vmul.f32 -1.442695, %v618_v51  ;;  %v347_v48 = vrot.slane %v1159_v21, 1  ;;  %v504_v51 = vperm.slane %v1179_v15, 0 }
 0xbed   :  { %907 = vpow2.f32 %v860_v52  ;;  %v581_v52 = vrot.slane %v1189_v45, 1 }
 0xbf3   :  { %v908_v53 = vpop.eup %907 }
 0xbf4   :  { %v622_v54 = vadd.f32 1.0, %v908_v53  ;;  %v583_v53 = vperm.slane %v581_v52, 0 }
 0xbf6   :  { %909 = vrcp.f32 %v622_v54  ;;  %v634_v61 = vand.u32 2147483648, %v622_v54  ;;  %vm628_vm9 = vweird.f32 %v622_v54  ;;  %v632_v62 = vand.u32 2147483647, %v622_v54 }
 0xbf8   :  { %v635_v0 = vor.u32 1.1754944e-38, %v634_v61  ;;  %vm633_vm11 = vcmp.eq.f32.partialorder %v632_v62, 8.507059e+37 }
 0xbfc   :  { %v910_v55 = vpop.eup %909 }
 0xbfd   :  { %v624_v56 = vmul.f32 %v910_v55, %v622_v54  ;;  %vm629_vm8 = vweird.f32 %v910_v55  ;;  %v773_v54 = vld [vmem:[#allocation2 + $0xe] sm:$0x3] }
 0xbfe   :  { %vm630_vm10 = vmor %vm628_vm9, %vm629_vm8 }
 0xbff   :  { %v625_v58 = vsub.f32 1.0, %v624_v56 }
 0xc01   :  { %v626_v59 = vmul.f32 %v910_v55, %v625_v58 }
 0xc03   :  { %v627_v60 = vadd.f32 %v910_v55, %v626_v59 }
 0xc05   :  { %v631_v63 = vsel %vm630_vm10, %v910_v55, %v627_v60 }
 0xc06   :  { %v636_v2 = vsel %vm633_vm11, %v635_v0, %v631_v63 }
 0xc07   :  { %v650_v7 = vsub.f32 1.0, %v636_v2  ;;  %v656_v9 = vmul.f32 %v636_v2, %v1189_v45 }
 0xc5d   :  { %v641_v1 = vpop.permute.xlu1 %640 }
 0xc5e   :  { %v643_v3 = vmul.f32 %v641_v1, %v636_v2 }
 0xc60   :  { %645 = vrot.lane.b32.xlu2 %v643_v3, %s1059_s17 }
 0xcba   :  { %v646_v4 = vpop.permute.xlu2 %645 }
 0xcbb   :  { %v648_v5 = vadd.f32 %v646_v4, %v617_v49  ;;  %v349_v49 = vperm.slane %v347_v48, 0 }
 0xcbd   :  { %911 = vtanh.f32 %v648_v5 }
 0xcc3   :  { %v912_v6 = vpop.eup %911 }
 0xcc4   :  { %652 = vrot.lane.b32.xlu0 %v912_v6, %s1061_s3 }
 0xd36   :  { %v653_v8 = vpop.permute.xlu0 %652 }
 0xd37   :  { %v655_v10 = vmul.f32 %v653_v8, %v650_v7  ;;  %v268_v8 = vrot.slane %v1149_v57, 1 }
 0xd39   :  { %v1199_v11 = vadd.f32 %v656_v9, %v655_v10  ;;  %v270_v10 = vperm.slane %v268_v8, 0 }
 0xd3b   :  { %670 = vrot.lane.b32.xlu1 %v1199_v11, %s1061_s3 }
 0xdad   :  { %v671_v12 = vpop.permute.xlu1 %670 }
 0xdae   :  { %861 = vmatmul.msk.f32.vlgmr.msra.gmra.mxu0 %vm194_vm1, %v671_v12 }
 0xe2b   :  { %v691_v13 = vpop.f32.mrf.mxu0 }
 0xe2c   :  { %v716_v14 = vadd.f32 %v691_v13, %v1134_v24  ;;  %v696_v17 = vadd.f32 %v695_v16, %v691_v13  ;;  %v426_v13 = vperm.slane %v1169_v50, 0 }
 0xe2e   :  { %718 = vrot.lane.b32.xlu2 %v716_v14, %s1059_s17  ;;  %v862_v18 = vmul.f32 -1.442695, %v696_v17  ;;  %v503_v14 = vrot.slane %v1179_v15, 1 }
 0xe30   :  { %913 = vpow2.f32 %v862_v18  ;;  %v505_v57 = vperm.slane %v503_v14, 0  ;;  %v660_v18 = vperm.slane %v1199_v11, 0 }
 0xe36   :  { %v914_v19 = vpop.eup %913 }
 0xe37   :  { %v700_v20 = vadd.f32 1.0, %v914_v19 }
 0xe39   :  { %915 = vrcp.f32 %v700_v20  ;;  %v712_v28 = vand.u32 2147483648, %v700_v20  ;;  %vm706_vm13 = vweird.f32 %v700_v20  ;;  %v710_v29 = vand.u32 2147483647, %v700_v20 }
 0xe3b   :  { %v713_v31 = vor.u32 1.1754944e-38, %v712_v28  ;;  %vm711_vm15 = vcmp.eq.f32.partialorder %v710_v29, 8.507059e+37  ;;  %v348_v28 = vperm.slane %v1159_v21, 0  ;;  %v425_v29 = vrot.slane %v1169_v50, 1 }
 0xe3c   :  { %v659_v21 = vrot.slane %v1199_v11, 1 }
 0xe3f   :  { %v916_v22 = vpop.eup %915 }
 0xe40   :  { %v702_v23 = vmul.f32 %v916_v22, %v700_v20  ;;  %vm707_vm12 = vweird.f32 %v916_v22 }
 0xe41   :  { %vm708_vm14 = vmor %vm706_vm13, %vm707_vm12 }
 0xe42   :  { %v703_v25 = vsub.f32 1.0, %v702_v23 }
 0xe44   :  { %v704_v26 = vmul.f32 %v916_v22, %v703_v25 }
 0xe46   :  { %v705_v27 = vadd.f32 %v916_v22, %v704_v26 }
 0xe48   :  { %v709_v30 = vsel %vm708_vm14, %v916_v22, %v705_v27 }
 0xe49   :  { %v714_v33 = vsel %vm711_vm15, %v713_v31, %v709_v30  ;;  %v427_v31 = vperm.slane %v425_v29, 0 }
 0xe4a   :  { %v728_v38 = vsub.f32 1.0, %v714_v33  ;;  %v734_v40 = vmul.f32 %v714_v33, %v1199_v11 }
 0xe88   :  { %v719_v32 = vpop.permute.xlu2 %718 }
 0xe89   :  { %v721_v34 = vmul.f32 %v719_v32, %v714_v33  ;;  %v582_v33 = vperm.slane %v1189_v45, 0 }
 0xe8b   :  { %723 = vrot.lane.b32.xlu0 %v721_v34, %s1059_s17 }
 0xefd   :  { %v724_v35 = vpop.permute.xlu0 %723 }
 0xefe   :  { %v726_v36 = vadd.f32 %v724_v35, %v695_v16  ;;  %v661_v35 = vperm.slane %v659_v21, 0 }
 0xf00   :  { %917 = vtanh.f32 %v726_v36 }
 0xf06   :  { %v918_v37 = vpop.eup %917 }
 0xf07   :  { %730 = vrot.lane.b32.xlu1 %v918_v37, %s1061_s3 }
 0xf79   :  { %v731_v39 = vpop.permute.xlu1 %730 }
 0xf7a   :  { %v733_v41 = vmul.f32 %v731_v39, %v728_v38 }
 0xf7c   :  { %v1209_v42 = vadd.f32 %v734_v40, %v733_v41 }
 0xf7e   :  { %748 = vrot.lane.b32.xlu2 %v1209_v42, %s1061_s3  ;;  %v737_v19 = vrot.slane %v1209_v42, 1 }
 0xf80   :  { %v739_v22 = vperm.slane %v737_v19, 0 }
 0xfd8   :  { %v749_v43 = vpop.permute.xlu2 %748 }
 0xfd9   :  { %863 = vmatmul.msk.f32.vlgmr.msra.gmra.mxu1 %vm194_vm1, %v749_v43 }
0x1056   :  { %v769_v44 = vpop.f32.mrf.mxu1 }
0x1057   :  { %v794_v46 = vadd.f32 %v769_v44, %v1134_v24  ;;  %v738_v24 = vperm.slane %v1209_v42, 0  ;;  %v774_v55 = vadd.f32 %v773_v54, %v769_v44 }
0x1059   :  { %796 = vrot.lane.b32.xlu0 %v794_v46, %s1059_s17  ;;  %v864_v56 = vmul.f32 -1.442695, %v774_v55 }
0x105b   :  { %919 = vpow2.f32 %v864_v56 }
0x1061   :  { %271 = vrot.lane.b32.xlu0 %v269_v47, %s1061_s3  ;;  %v920_v58 = vpop.eup %919 }
0x1062   :  { %v778_v59 = vadd.f32 1.0, %v920_v58 }
0x1064   :  { %921 = vrcp.f32 %v778_v59  ;;  %v790_v1 = vand.u32 2147483648, %v778_v59  ;;  %vm784_vm0 = vweird.f32 %v778_v59  ;;  %v788_v2 = vand.u32 2147483647, %v778_v59 }
0x1066   :  { %v791_v4 = vor.u32 1.1754944e-38, %v790_v1  ;;  %vm789_vm3 = vcmp.eq.f32.partialorder %v788_v2, 8.507059e+37 }
0x1069   :  { %352 = vrot.lane.b32.xlu0 %v349_v49, %s1061_s3 }
0x106a   :  { %v922_v60 = vpop.eup %921 }
0x106b   :  { %v780_v61 = vmul.f32 %v922_v60, %v778_v59  ;;  %vm785_vm1 = vweird.f32 %v922_v60 }
0x106c   :  { %vm786_vm2 = vmor %vm784_vm0, %vm785_vm1 }
0x106d   :  { %v781_v62 = vsub.f32 1.0, %v780_v61 }
0x106f   :  { %v782_v63 = vmul.f32 %v922_v60, %v781_v62 }
0x1071   :  { %506 = vrot.lane.b32.xlu0 %v504_v51, %s1061_s3  ;;  %v783_v0 = vadd.f32 %v922_v60, %v782_v63 }
0x1073   :  { %v787_v3 = vsel %vm786_vm2, %v922_v60, %v783_v0 }
0x1074   :  { %v792_v6 = vsel %vm789_vm3, %v791_v4, %v787_v3 }
0x1075   :  { %v806_v50 = vsub.f32 1.0, %v792_v6  ;;  %v812_v37 = vmul.f32 %v792_v6, %v1209_v42 }
0x1079   :  { %586 = vrot.lane.b32.xlu0 %v583_v53, %s1061_s3 }
0x1081   :  { %740 = vrot.lane.b32.xlu0 %v738_v24, %s1061_s3 }
0x10cb   :  { %v797_v5 = vpop.permute.xlu0 %796 }
0x10cc   :  { %v799_v7 = vmul.f32 %v797_v5, %v792_v6 }
0x10ce   :  { %801 = vrot.lane.b32.xlu1 %v799_v7, %s1059_s17 }
0x10d3   :  { %v272_v9 = vpop.permute.xlu0 %271 }
0x10d4   :  { %278 = vst.msk [vmem:[#allocation11] sm:$0x1] %vm277_vm4, %v272_v9 }
0x10d6   :  { %273 = vrot.lane.b32.xlu1 %v270_v10, %s1061_s3 }
0x10db   :  { %v353_v12 = vpop.permute.xlu0 %352 }
0x10dc   :  { %357 = vst.msk [vmem:[#allocation11 + $0x9] sm:$0x1] %vm277_vm4, %v353_v12 }
0x10de   :  { %428 = vrot.lane.b32.xlu1 %v426_v13, %s1061_s3 }
0x10e3   :  { %v507_v16 = vpop.permute.xlu0 %506 }
0x10e4   :  { %512 = vst.msk [vmem:[#allocation11 + $0x3] sm:$0x1] %vm277_vm4, %v507_v16 }
0x10e6   :  { %508 = vrot.lane.b32.xlu1 %v505_v57, %s1061_s3 }
0x10eb   :  { %v587_v17 = vpop.permute.xlu0 %586 }
0x10ec   :  { %591 = vst.msk [vmem:[#allocation11 + $0xc] sm:$0x1] %vm277_vm4, %v587_v17 }
0x10ee   :  { %662 = vrot.lane.b32.xlu1 %v660_v18, %s1061_s3 }
0x10f3   :  { %v741_v20 = vpop.permute.xlu0 %740 }
0x10f4   :  { %746 = vst.msk [vmem:[#allocation11 + $0x6] sm:$0x1] %vm277_vm4, %v741_v20 }
0x10f6   :  { %742 = vrot.lane.b32.xlu1 %v739_v22, %s1061_s3 }
0x1140   :  { %v802_v15 = vpop.permute.xlu1 %801 }
0x1141   :  { %v804_v23 = vadd.f32 %v802_v15, %v773_v54 }
0x1143   :  { %923 = vtanh.f32 %v804_v23 }
0x1148   :  { %v274_v25 = vpop.permute.xlu1 %273 }
0x1149   :  { %v924_v26 = vpop.eup %923  ;;  %279 = vst.msk [vmem:[#allocation11 + $0x8] sm:$0x1] %vm277_vm4, %v274_v25 }
0x114a   :  { %808 = vrot.lane.b32.xlu2 %v924_v26, %s1061_s3 }
0x1150   :  { %v429_v27 = vpop.permute.xlu1 %428 }
0x1151   :  { %434 = vst.msk [vmem:[#allocation11 + $0x2] sm:$0x1] %vm277_vm4, %v429_v27 }
0x1152   :  { %350 = vrot.lane.b32.xlu2 %v348_v28, %s1061_s3 }
0x1158   :  { %v509_v30 = vpop.permute.xlu1 %508 }
0x1159   :  { %513 = vst.msk [vmem:[#allocation11 + $0xb] sm:$0x1] %vm277_vm4, %v509_v30 }
0x115a   :  { %430 = vrot.lane.b32.xlu2 %v427_v31, %s1061_s3 }
0x1160   :  { %v663_v32 = vpop.permute.xlu1 %662 }
0x1161   :  { %668 = vst.msk [vmem:[#allocation11 + $0x5] sm:$0x1] %vm277_vm4, %v663_v32 }
0x1162   :  { %584 = vrot.lane.b32.xlu2 %v582_v33, %s1061_s3 }
0x1168   :  { %v743_v34 = vpop.permute.xlu1 %742 }
0x1169   :  { %747 = vst.msk [vmem:[#allocation11 + $0xe] sm:$0x1] %vm277_vm4, %v743_v34 }
0x116a   :  { %664 = vrot.lane.b32.xlu2 %v661_v35, %s1061_s3 }
0x11a4   :  { %v809_v36 = vpop.permute.xlu2 %808 }
0x11a5   :  { %v811_v38 = vmul.f32 %v809_v36, %v806_v50 }
0x11a7   :  { %v813_v39 = vadd.f32 %v812_v37, %v811_v38 }
0x11a9   :  { %v816_v40 = vperm.slane %v813_v39, 0  ;;  %v815_v45 = vrot.slane %v813_v39, 1 }
0x11ab   :  { %818 = vrot.lane.b32.xlu2 %v816_v40, %s1061_s3  ;;  %v817_v41 = vperm.slane %v815_v45, 0 }
0x11ac   :  { %v351_v43 = vpop.permute.xlu2 %350 }
0x11ad   :  { %356 = vst.msk [vmem:[#allocation11 + $0x1] sm:$0x1] %vm277_vm4, %v351_v43  ;;  %820 = vrot.lane.b32.xlu0 %v817_v41, %s1061_s3 }
0x11b4   :  { %v431_v11 = vpop.permute.xlu2 %430 }
0x11b5   :  { %435 = vst.msk [vmem:[#allocation11 + $0xa] sm:$0x1] %vm277_vm4, %v431_v11 }
0x11bc   :  { %v585_v44 = vpop.permute.xlu2 %584 }
0x11bd   :  { %590 = vst.msk [vmem:[#allocation11 + $0x4] sm:$0x1] %vm277_vm4, %v585_v44 }
0x11c4   :  { %v665_v46 = vpop.permute.xlu2 %664 }
0x11c5   :  { %669 = vst.msk [vmem:[#allocation11 + $0xd] sm:$0x1] %vm277_vm4, %v665_v46 }
0x1205   :  { %v819_v42 = vpop.permute.xlu2 %818 }
0x1206   :  { %824 = vst.msk [vmem:[#allocation11 + $0x7] sm:$0x1] %vm277_vm4, %v819_v42 }
0x121f   :  { %v821_v47 = vpop.permute.xlu0 %820 }
0x1220   :  { %825 = vst.msk [vmem:[#allocation11 + $0xf] sm:$0x1] %vm277_vm4, %v821_v47 }
0x1221   :  { %838 = dma.vmem_to_hbm [thread:$0]  %s831_s21, 256, %s833_s24, [#allocation5], %s1054_s29, %s1054_s29, %s1055_s30  }
0x1222   :  { %1051 = dma.done.wait [#allocation5], 256  }
0x1223   :  { %1052 = vsyncadd [#allocation5], 4294967040 }
0x1224   :  { %843 = vsyncpa [#allocation4], 1 }
0x1225   :  { %844 = vsyncpa [#allocation7], 1 }
0x1226   :  { %845 = vsyncpa [#allocation10], 1 }
0x1227   :  { %846 = vsyncpa [#allocation5], 1 }

</bundles_post_ra>
